<compile_context>
chip_gen: v7x
topology: tpu7x:2x2x1
jax: 0.10.0
libtpu: 0.0.40
codegen_flags: <defaults>
</compile_context>

<pallas_src>
import jax
import jax.numpy as jnp
from jax.experimental import pallas as pl
from jax.experimental.pallas import tpu as pltpu

# ---- module hyper-parameters implied by __init__ -----------------------
CTX_DIM = 512                                   # ctx_dim
N_CTX = 4                                       # n_ctx
N_CLS_CTX = 4                                   # n_cls_ctx
SEQ_LEN = 77                                    # clip.tokenize context length
N_PREFIX = N_CTX + 1                            # 5
N_SUFFIX = SEQ_LEN - (N_CTX + 1 + N_CLS_CTX)    # 68
NUM_CLASS = 16


def _prompt_kernel(label_ref, prefix_ref, cls_ref, suffix_ref, out_ref):
    """Assemble TB lane-flattened prompts.

    label_ref : VMEM (TB, 1) int32
    prefix_ref: VMEM (1, 5*512)        resident (constant index_map)
    cls_ref   : VMEM (num_class, 4*512) resident
    suffix_ref: VMEM (1, 68*512)       resident
    out_ref   : VMEM (TB, 77*512)      lane-dense output block
    """
    tb = out_ref.shape[0]
    prefix_len = prefix_ref.shape[1]
    suffix_len = suffix_ref.shape[1]
    num_class, cls_len = cls_ref.shape
    cls_start = prefix_len                       # 2560  (multiple of 128)
    suf_start = prefix_len + cls_len             # 4608  (multiple of 128)

    # Bulk, lane-aligned broadcast stores for the shared prefix / suffix.
    out_ref[:, :prefix_len] = jnp.broadcast_to(prefix_ref[...], (tb, prefix_len))
    out_ref[:, suf_start:suf_start + suffix_len] = jnp.broadcast_to(
        suffix_ref[...], (tb, suffix_len))

    # Exact, vectorised class-context gather: a select chain over the small
    # static class table (pure copy semantics, no arithmetic -> bit-exact for
    # any dtype).  One aligned (TB, cls_len) store at lane offset 2560.
    # TODO(synk): for very large num_class the table would not fit VMEM; that
    # case would use a scalar-prefetch row-gather (pl.Element index_map).
    lbl = label_ref[...]                                       # (TB, 1) int32
    cls_rows = jnp.broadcast_to(cls_ref[0:1, :], (tb, cls_len))
    for c in range(1, num_class):
        cls_rows = jnp.where(lbl == c, cls_ref[c:c + 1, :], cls_rows)
    out_ref[:, cls_start:suf_start] = cls_rows


def _choose_batch_tile(b, sublane, tb_cap):
    """Batch-tile rows per grid step.

    <= tb_cap (32 keeps double-buffered output ~10 MiB f32, inside v5e's
    16 MiB default scoped VMEM; raise to 64 on v6e / for bf16 if desired),
    sublane-aligned whenever the grid has >1 step, >=2 steps for larger
    batches so v7x's two TensorCores both get work, and sized to limit dead
    padded rows on ragged batch sizes.
    """
    tb_cap = max(sublane, (tb_cap // sublane) * sublane)
    if b <= sublane:
        return b                      # single block == full array dims
    n_steps = max(pl.cdiv(b, tb_cap), 2)
    tb = (b // n_steps) // sublane * sublane
    return int(min(max(tb, sublane), tb_cap))


def prompt_learner_forward(label, cls_ctx, token_prefix, token_suffix, *,
                           tb_cap=32):
    """label: (B,) int ; cls_ctx: (num_class, 4, 512) ;
    token_prefix: (1, 5, 512) ; token_suffix: (1, 68, 512) -> (B, 77, 512)."""
    b = int(label.shape[0])
    num_class, n_cls_ctx, ctx_dim = cls_ctx.shape
    n_prefix = token_prefix.shape[1]
    n_suffix = token_suffix.shape[1]
    seq_len = n_prefix + n_cls_ctx + n_suffix
    dtype = cls_ctx.dtype
    if token_prefix.dtype != dtype or token_suffix.dtype != dtype:
        raise ValueError("cls_ctx / token_prefix / token_suffix dtypes must match")

    prefix_len = n_prefix * ctx_dim               # 2560
    cls_len = n_cls_ctx * ctx_dim                 # 2048
    suffix_len = n_suffix * ctx_dim               # 34816
    flat_len = seq_len * ctx_dim                  # 39424

    # Lane-flatten the parameter tables (tiny, one-off reshapes).
    prefix2d = token_prefix.reshape(1, prefix_len)
    suffix2d = token_suffix.reshape(1, suffix_len)
    cls2d = cls_ctx.reshape(num_class, cls_len)

    itemsize = jnp.dtype(dtype).itemsize
    sublane = 8 * max(1, 4 // itemsize)           # 8 for f32, 16 for bf16
    tb = _choose_batch_tile(b, sublane, tb_cap)
    n_blocks = pl.cdiv(b, tb)
    b_pad = n_blocks * tb

    # Clamp labels (no OOB reads on TPU are ever checked) and pad the tail;
    # padded rows are sliced off below.
    label = jnp.clip(label.astype(jnp.int32), 0, num_class - 1)
    if b_pad != b:
        label = jnp.pad(label, (0, b_pad - b))
    label2d = label.reshape(b_pad, 1)

    grid_spec = pltpu.PrefetchScalarGridSpec(
        num_scalar_prefetch=0,
        grid=(n_blocks,),
        in_specs=[
            # labels: one (TB, 1) block per grid step
            pl.BlockSpec((tb, 1), lambda i: (i, 0)),
            # resident tables: constant index_map => fetched once, no re-DMA
            pl.BlockSpec((1, prefix_len), lambda i: (0, 0)),
            pl.BlockSpec((num_class, cls_len), lambda i: (0, 0)),
            pl.BlockSpec((1, suffix_len), lambda i: (0, 0)),
        ],
        out_specs=pl.BlockSpec((tb, flat_len), lambda i: (i, 0)),
    )

    out = pl.pallas_call(
        _prompt_kernel,
        out_shape=jax.ShapeDtypeStruct((b_pad, flat_len), dtype),
        grid_spec=grid_spec,
        compiler_params=pltpu.CompilerParams(
            # Every batch tile is independent -> shard grid across TCs on v7x.
            dimension_semantics=("parallel",)),
    )(label2d, prefix2d, cls2d, suffix2d)

    out = out[:b] if b_pad != b else out
    return out.reshape(b, seq_len, ctx_dim)


def prompt_learner_ref(label, cls_ctx, token_prefix, token_suffix):
    b = label.shape[0]
    prefix = jnp.broadcast_to(token_prefix, (b,) + token_prefix.shape[1:])
    suffix = jnp.broadcast_to(token_suffix, (b,) + token_suffix.shape[1:])
    return jnp.concatenate([prefix, cls_ctx[label], suffix], axis=1)


if __name__ == "__main__":
    key = jax.random.PRNGKey(0)
    k_cls, k_emb, k_lbl = jax.random.split(key, 3)

    dtype = jnp.float32

    # Learnable class context vectors: normal(std=0.02), as in nn.init.normal_.
    cls_ctx = (0.02 * jax.random.normal(
        k_cls, (NUM_CLASS, N_CLS_CTX, CTX_DIM))).astype(dtype)

    # Synthetic token_embedding output for the tokenized prompt (1, 77, 512).
    # TODO(synk): real CLIP tokenize + token_embedding lookup (host-side
    # __init__ work) is replaced by a deterministic random embedding; the
    # forward pass only slices/concatenates it.
    embedding = jax.random.normal(k_emb, (1, SEQ_LEN, CTX_DIM)).astype(dtype)
    token_prefix = embedding[:, :N_CTX + 1, :]                 # (1, 5, 512)
    token_suffix = embedding[:, N_CTX + 1 + N_CLS_CTX:, :]     # (1, 68, 512)

    # Small batch: single grid step, block == full array dims.
    batch = 2
    label = jax.random.randint(k_lbl, (batch,), 0, NUM_CLASS, dtype=jnp.int32)
    out = jax.block_until_ready(
        prompt_learner_forward(label, cls_ctx, token_prefix, token_suffix))
    ref = prompt_learner_ref(label, cls_ctx, token_prefix, token_suffix)
    assert out.shape == (batch, SEQ_LEN, CTX_DIM), out.shape
    assert jnp.array_equal(out, ref), "mismatch vs reference"

    # Ragged batch: multi-step grid + padded-tail path.
    batch2 = 37
    label2 = jax.random.randint(k_lbl, (batch2,), 0, NUM_CLASS, dtype=jnp.int32)
    out2 = jax.block_until_ready(
        prompt_learner_forward(label2, cls_ctx, token_prefix, token_suffix))
    ref2 = prompt_learner_ref(label2, cls_ctx, token_prefix, token_suffix)
    assert out2.shape == (batch2, SEQ_LEN, CTX_DIM), out2.shape
    assert jnp.array_equal(out2, ref2), "mismatch vs reference (tail)"

    # bf16 parameter path (halves the HBM writeback, the kernel's only traffic).
    bf = jnp.bfloat16
    out_bf = jax.block_until_ready(prompt_learner_forward(
        label, cls_ctx.astype(bf), token_prefix.astype(bf), token_suffix.astype(bf)))
    ref_bf = prompt_learner_ref(
        label, cls_ctx.astype(bf), token_prefix.astype(bf), token_suffix.astype(bf))
    assert out_bf.dtype == bf
    assert jnp.array_equal(out_bf, ref_bf), "mismatch vs reference (bf16)"

    print("KERNEL_OK")
</pallas_src>

<mosaic_0001>
module attributes {stable_mosaic.version = 11 : i64} {
  func.func @_prompt_kernel(%arg0: i32, %arg1: memref<2x1xi32, #tpu.memory_space<vmem>>, %arg2: memref<1x2560xf32, #tpu.memory_space<vmem>>, %arg3: memref<16x2048xf32, #tpu.memory_space<vmem>>, %arg4: memref<1x34816xf32, #tpu.memory_space<vmem>>, %arg5: memref<2x39424xf32, #tpu.memory_space<vmem>>) attributes {dimension_semantics = [#tpu.dimension_semantics<parallel>], iteration_bounds = array<i64: 1>, scalar_prefetch = 0 : i64, scratch_operands = 0 : i64, tpu.core_type = #tpu.core_type<tc>, window_params = [{transform_indices = @transform_0, window_bounds = array<i64: 2, 1>}, {pipeline_mode = #tpu.pipeline_mode<synchronous>, transform_indices = @transform_1, window_bounds = array<i64: 1, 2560>}, {pipeline_mode = #tpu.pipeline_mode<synchronous>, transform_indices = @transform_2, window_bounds = array<i64: 16, 2048>}, {pipeline_mode = #tpu.pipeline_mode<synchronous>, transform_indices = @transform_3, window_bounds = array<i64: 1, 34816>}, {transform_indices = @transform_4, window_bounds = array<i64: 2, 39424>}]} {
    %c0 = arith.constant 0 : index
    %c0_0 = arith.constant 0 : index
    %0 = vector.load %arg2[%c0, %c0_0] : memref<1x2560xf32, #tpu.memory_space<vmem>>, vector<1x2560xf32>
    %1 = vector.shape_cast %0 : vector<1x2560xf32> to vector<1x2560xf32>
    %2 = vector.broadcast %1 : vector<1x2560xf32> to vector<2x2560xf32>
    %c0_1 = arith.constant 0 : index
    %c0_2 = arith.constant 0 : index
    %3 = vector.load %arg5[%c0_1, %c0_2] : memref<2x39424xf32, #tpu.memory_space<vmem>>, vector<2x2560xf32>
    tpu.vector_store %arg5[%c0_1, %c0_2], %2 {strides = array<i32>} : memref<2x39424xf32, #tpu.memory_space<vmem>>, vector<2x2560xf32>,
    %c0_3 = arith.constant 0 : index
    %c0_4 = arith.constant 0 : index
    %4 = vector.load %arg4[%c0_3, %c0_4] : memref<1x34816xf32, #tpu.memory_space<vmem>>, vector<1x34816xf32>
    %5 = vector.shape_cast %4 : vector<1x34816xf32> to vector<1x34816xf32>
    %6 = vector.broadcast %5 : vector<1x34816xf32> to vector<2x34816xf32>
    %c0_5 = arith.constant 0 : index
    %c4608 = arith.constant 4608 : index
    %7 = vector.load %arg5[%c0_5, %c4608] : memref<2x39424xf32, #tpu.memory_space<vmem>>, vector<2x34816xf32>
    tpu.vector_store %arg5[%c0_5, %c4608], %6 {strides = array<i32>} : memref<2x39424xf32, #tpu.memory_space<vmem>>, vector<2x34816xf32>,
    %c0_6 = arith.constant 0 : index
    %c0_7 = arith.constant 0 : index
    %8 = vector.load %arg1[%c0_6, %c0_7] : memref<2x1xi32, #tpu.memory_space<vmem>>, vector<2x1xi32>
    %c0_8 = arith.constant 0 : index
    %c0_9 = arith.constant 0 : index
    %9 = vector.load %arg3[%c0_8, %c0_9] : memref<16x2048xf32, #tpu.memory_space<vmem>>, vector<1x2048xf32>
    %10 = vector.shape_cast %9 : vector<1x2048xf32> to vector<1x2048xf32>
    %11 = vector.broadcast %10 : vector<1x2048xf32> to vector<2x2048xf32>
    %c1_i32 = arith.constant 1 : i32
    %12 = vector.broadcast %c1_i32 : i32 to vector<2x1xi32>
    %13 = arith.cmpi eq, %8, %12 : vector<2x1xi32>
    %c1 = arith.constant 1 : index
    %c0_10 = arith.constant 0 : index
    %14 = vector.load %arg3[%c1, %c0_10] : memref<16x2048xf32, #tpu.memory_space<vmem>>, vector<1x2048xf32>
    %15 = vector.shape_cast %13 : vector<2x1xi1> to vector<2x1xi1>
    %16 = vector.broadcast %15 : vector<2x1xi1> to vector<2x2048xi1>
    %17 = vector.shape_cast %14 : vector<1x2048xf32> to vector<1x2048xf32>
    %18 = vector.broadcast %17 : vector<1x2048xf32> to vector<2x2048xf32>
    %19 = arith.select %16, %18, %11 : vector<2x2048xi1>, vector<2x2048xf32>
    %c2_i32 = arith.constant 2 : i32
    %20 = vector.broadcast %c2_i32 : i32 to vector<2x1xi32>
    %21 = arith.cmpi eq, %8, %20 : vector<2x1xi32>
    %c2 = arith.constant 2 : index
    %c0_11 = arith.constant 0 : index
    %22 = vector.load %arg3[%c2, %c0_11] : memref<16x2048xf32, #tpu.memory_space<vmem>>, vector<1x2048xf32>
    %23 = vector.shape_cast %21 : vector<2x1xi1> to vector<2x1xi1>
    %24 = vector.broadcast %23 : vector<2x1xi1> to vector<2x2048xi1>
    %25 = vector.shape_cast %22 : vector<1x2048xf32> to vector<1x2048xf32>
    %26 = vector.broadcast %25 : vector<1x2048xf32> to vector<2x2048xf32>
    %27 = arith.select %24, %26, %19 : vector<2x2048xi1>, vector<2x2048xf32>
    %c3_i32 = arith.constant 3 : i32
    %28 = vector.broadcast %c3_i32 : i32 to vector<2x1xi32>
    %29 = arith.cmpi eq, %8, %28 : vector<2x1xi32>
    %c3 = arith.constant 3 : index
    %c0_12 = arith.constant 0 : index
    %30 = vector.load %arg3[%c3, %c0_12] : memref<16x2048xf32, #tpu.memory_space<vmem>>, vector<1x2048xf32>
    %31 = vector.shape_cast %29 : vector<2x1xi1> to vector<2x1xi1>
    %32 = vector.broadcast %31 : vector<2x1xi1> to vector<2x2048xi1>
    %33 = vector.shape_cast %30 : vector<1x2048xf32> to vector<1x2048xf32>
    %34 = vector.broadcast %33 : vector<1x2048xf32> to vector<2x2048xf32>
    %35 = arith.select %32, %34, %27 : vector<2x2048xi1>, vector<2x2048xf32>
    %c4_i32 = arith.constant 4 : i32
    %36 = vector.broadcast %c4_i32 : i32 to vector<2x1xi32>
    %37 = arith.cmpi eq, %8, %36 : vector<2x1xi32>
    %c4 = arith.constant 4 : index
    %c0_13 = arith.constant 0 : index
    %38 = vector.load %arg3[%c4, %c0_13] : memref<16x2048xf32, #tpu.memory_space<vmem>>, vector<1x2048xf32>
    %39 = vector.shape_cast %37 : vector<2x1xi1> to vector<2x1xi1>
    %40 = vector.broadcast %39 : vector<2x1xi1> to vector<2x2048xi1>
    %41 = vector.shape_cast %38 : vector<1x2048xf32> to vector<1x2048xf32>
    %42 = vector.broadcast %41 : vector<1x2048xf32> to vector<2x2048xf32>
    %43 = arith.select %40, %42, %35 : vector<2x2048xi1>, vector<2x2048xf32>
    %c5_i32 = arith.constant 5 : i32
    %44 = vector.broadcast %c5_i32 : i32 to vector<2x1xi32>
    %45 = arith.cmpi eq, %8, %44 : vector<2x1xi32>
    %c5 = arith.constant 5 : index
    %c0_14 = arith.constant 0 : index
    %46 = vector.load %arg3[%c5, %c0_14] : memref<16x2048xf32, #tpu.memory_space<vmem>>, vector<1x2048xf32>
    %47 = vector.shape_cast %45 : vector<2x1xi1> to vector<2x1xi1>
    %48 = vector.broadcast %47 : vector<2x1xi1> to vector<2x2048xi1>
    %49 = vector.shape_cast %46 : vector<1x2048xf32> to vector<1x2048xf32>
    %50 = vector.broadcast %49 : vector<1x2048xf32> to vector<2x2048xf32>
    %51 = arith.select %48, %50, %43 : vector<2x2048xi1>, vector<2x2048xf32>
    %c6_i32 = arith.constant 6 : i32
    %52 = vector.broadcast %c6_i32 : i32 to vector<2x1xi32>
    %53 = arith.cmpi eq, %8, %52 : vector<2x1xi32>
    %c6 = arith.constant 6 : index
    %c0_15 = arith.constant 0 : index
    %54 = vector.load %arg3[%c6, %c0_15] : memref<16x2048xf32, #tpu.memory_space<vmem>>, vector<1x2048xf32>
    %55 = vector.shape_cast %53 : vector<2x1xi1> to vector<2x1xi1>
    %56 = vector.broadcast %55 : vector<2x1xi1> to vector<2x2048xi1>
    %57 = vector.shape_cast %54 : vector<1x2048xf32> to vector<1x2048xf32>
    %58 = vector.broadcast %57 : vector<1x2048xf32> to vector<2x2048xf32>
    %59 = arith.select %56, %58, %51 : vector<2x2048xi1>, vector<2x2048xf32>
    %c7_i32 = arith.constant 7 : i32
    %60 = vector.broadcast %c7_i32 : i32 to vector<2x1xi32>
    %61 = arith.cmpi eq, %8, %60 : vector<2x1xi32>
    %c7 = arith.constant 7 : index
    %c0_16 = arith.constant 0 : index
    %62 = vector.load %arg3[%c7, %c0_16] : memref<16x2048xf32, #tpu.memory_space<vmem>>, vector<1x2048xf32>
    %63 = vector.shape_cast %61 : vector<2x1xi1> to vector<2x1xi1>
    %64 = vector.broadcast %63 : vector<2x1xi1> to vector<2x2048xi1>
    %65 = vector.shape_cast %62 : vector<1x2048xf32> to vector<1x2048xf32>
    %66 = vector.broadcast %65 : vector<1x2048xf32> to vector<2x2048xf32>
    %67 = arith.select %64, %66, %59 : vector<2x2048xi1>, vector<2x2048xf32>
    %c8_i32 = arith.constant 8 : i32
    %68 = vector.broadcast %c8_i32 : i32 to vector<2x1xi32>
    %69 = arith.cmpi eq, %8, %68 : vector<2x1xi32>
    %c8 = arith.constant 8 : index
    %c0_17 = arith.constant 0 : index
    %70 = vector.load %arg3[%c8, %c0_17] : memref<16x2048xf32, #tpu.memory_space<vmem>>, vector<1x2048xf32>
    %71 = vector.shape_cast %69 : vector<2x1xi1> to vector<2x1xi1>
    %72 = vector.broadcast %71 : vector<2x1xi1> to vector<2x2048xi1>
    %73 = vector.shape_cast %70 : vector<1x2048xf32> to vector<1x2048xf32>
    %74 = vector.broadcast %73 : vector<1x2048xf32> to vector<2x2048xf32>
    %75 = arith.select %72, %74, %67 : vector<2x2048xi1>, vector<2x2048xf32>
    %c9_i32 = arith.constant 9 : i32
    %76 = vector.broadcast %c9_i32 : i32 to vector<2x1xi32>
    %77 = arith.cmpi eq, %8, %76 : vector<2x1xi32>
    %c9 = arith.constant 9 : index
    %c0_18 = arith.constant 0 : index
    %78 = vector.load %arg3[%c9, %c0_18] : memref<16x2048xf32, #tpu.memory_space<vmem>>, vector<1x2048xf32>
    %79 = vector.shape_cast %77 : vector<2x1xi1> to vector<2x1xi1>
    %80 = vector.broadcast %79 : vector<2x1xi1> to vector<2x2048xi1>
    %81 = vector.shape_cast %78 : vector<1x2048xf32> to vector<1x2048xf32>
    %82 = vector.broadcast %81 : vector<1x2048xf32> to vector<2x2048xf32>
    %83 = arith.select %80, %82, %75 : vector<2x2048xi1>, vector<2x2048xf32>
    %c10_i32 = arith.constant 10 : i32
    %84 = vector.broadcast %c10_i32 : i32 to vector<2x1xi32>
    %85 = arith.cmpi eq, %8, %84 : vector<2x1xi32>
    %c10 = arith.constant 10 : index
    %c0_19 = arith.constant 0 : index
    %86 = vector.load %arg3[%c10, %c0_19] : memref<16x2048xf32, #tpu.memory_space<vmem>>, vector<1x2048xf32>
    %87 = vector.shape_cast %85 : vector<2x1xi1> to vector<2x1xi1>
    %88 = vector.broadcast %87 : vector<2x1xi1> to vector<2x2048xi1>
    %89 = vector.shape_cast %86 : vector<1x2048xf32> to vector<1x2048xf32>
    %90 = vector.broadcast %89 : vector<1x2048xf32> to vector<2x2048xf32>
    %91 = arith.select %88, %90, %83 : vector<2x2048xi1>, vector<2x2048xf32>
    %c11_i32 = arith.constant 11 : i32
    %92 = vector.broadcast %c11_i32 : i32 to vector<2x1xi32>
    %93 = arith.cmpi eq, %8, %92 : vector<2x1xi32>
    %c11 = arith.constant 11 : index
    %c0_20 = arith.constant 0 : index
    %94 = vector.load %arg3[%c11, %c0_20] : memref<16x2048xf32, #tpu.memory_space<vmem>>, vector<1x2048xf32>
    %95 = vector.shape_cast %93 : vector<2x1xi1> to vector<2x1xi1>
    %96 = vector.broadcast %95 : vector<2x1xi1> to vector<2x2048xi1>
    %97 = vector.shape_cast %94 : vector<1x2048xf32> to vector<1x2048xf32>
    %98 = vector.broadcast %97 : vector<1x2048xf32> to vector<2x2048xf32>
    %99 = arith.select %96, %98, %91 : vector<2x2048xi1>, vector<2x2048xf32>
    %c12_i32 = arith.constant 12 : i32
    %100 = vector.broadcast %c12_i32 : i32 to vector<2x1xi32>
    %101 = arith.cmpi eq, %8, %100 : vector<2x1xi32>
    %c12 = arith.constant 12 : index
    %c0_21 = arith.constant 0 : index
    %102 = vector.load %arg3[%c12, %c0_21] : memref<16x2048xf32, #tpu.memory_space<vmem>>, vector<1x2048xf32>
    %103 = vector.shape_cast %101 : vector<2x1xi1> to vector<2x1xi1>
    %104 = vector.broadcast %103 : vector<2x1xi1> to vector<2x2048xi1>
    %105 = vector.shape_cast %102 : vector<1x2048xf32> to vector<1x2048xf32>
    %106 = vector.broadcast %105 : vector<1x2048xf32> to vector<2x2048xf32>
    %107 = arith.select %104, %106, %99 : vector<2x2048xi1>, vector<2x2048xf32>
    %c13_i32 = arith.constant 13 : i32
    %108 = vector.broadcast %c13_i32 : i32 to vector<2x1xi32>
    %109 = arith.cmpi eq, %8, %108 : vector<2x1xi32>
    %c13 = arith.constant 13 : index
    %c0_22 = arith.constant 0 : index
    %110 = vector.load %arg3[%c13, %c0_22] : memref<16x2048xf32, #tpu.memory_space<vmem>>, vector<1x2048xf32>
    %111 = vector.shape_cast %109 : vector<2x1xi1> to vector<2x1xi1>
    %112 = vector.broadcast %111 : vector<2x1xi1> to vector<2x2048xi1>
    %113 = vector.shape_cast %110 : vector<1x2048xf32> to vector<1x2048xf32>
    %114 = vector.broadcast %113 : vector<1x2048xf32> to vector<2x2048xf32>
    %115 = arith.select %112, %114, %107 : vector<2x2048xi1>, vector<2x2048xf32>
    %c14_i32 = arith.constant 14 : i32
    %116 = vector.broadcast %c14_i32 : i32 to vector<2x1xi32>
    %117 = arith.cmpi eq, %8, %116 : vector<2x1xi32>
    %c14 = arith.constant 14 : index
    %c0_23 = arith.constant 0 : index
    %118 = vector.load %arg3[%c14, %c0_23] : memref<16x2048xf32, #tpu.memory_space<vmem>>, vector<1x2048xf32>
    %119 = vector.shape_cast %117 : vector<2x1xi1> to vector<2x1xi1>
    %120 = vector.broadcast %119 : vector<2x1xi1> to vector<2x2048xi1>
    %121 = vector.shape_cast %118 : vector<1x2048xf32> to vector<1x2048xf32>
    %122 = vector.broadcast %121 : vector<1x2048xf32> to vector<2x2048xf32>
    %123 = arith.select %120, %122, %115 : vector<2x2048xi1>, vector<2x2048xf32>
    %c15_i32 = arith.constant 15 : i32
    %124 = vector.broadcast %c15_i32 : i32 to vector<2x1xi32>
    %125 = arith.cmpi eq, %8, %124 : vector<2x1xi32>
    %c15 = arith.constant 15 : index
    %c0_24 = arith.constant 0 : index
    %126 = vector.load %arg3[%c15, %c0_24] : memref<16x2048xf32, #tpu.memory_space<vmem>>, vector<1x2048xf32>
    %127 = vector.shape_cast %125 : vector<2x1xi1> to vector<2x1xi1>
    %128 = vector.broadcast %127 : vector<2x1xi1> to vector<2x2048xi1>
    %129 = vector.shape_cast %126 : vector<1x2048xf32> to vector<1x2048xf32>
    %130 = vector.broadcast %129 : vector<1x2048xf32> to vector<2x2048xf32>
    %131 = arith.select %128, %130, %123 : vector<2x2048xi1>, vector<2x2048xf32>
    %c0_25 = arith.constant 0 : index
    %c2560 = arith.constant 2560 : index
    %132 = vector.load %arg5[%c0_25, %c2560] : memref<2x39424xf32, #tpu.memory_space<vmem>>, vector<2x2048xf32>
    tpu.vector_store %arg5[%c0_25, %c2560], %131 {strides = array<i32>} : memref<2x39424xf32, #tpu.memory_space<vmem>>, vector<2x2048xf32>,
    return
  }
  func.func @transform_0(%arg0: i32) -> (i32, i32) {
    %c0_i32 = arith.constant 0 : i32
    %c0_i32_0 = arith.constant 0 : i32
    return %arg0, %c0_i32 : i32, i32
  }
  func.func @transform_1(%arg0: i32) -> (i32, i32) {
    %c0_i32 = arith.constant 0 : i32
    %c0_i32_0 = arith.constant 0 : i32
    %c0_i32_1 = arith.constant 0 : i32
    return %c0_i32, %c0_i32_0 : i32, i32
  }
  func.func @transform_2(%arg0: i32) -> (i32, i32) {
    %c0_i32 = arith.constant 0 : i32
    %c0_i32_0 = arith.constant 0 : i32
    %c0_i32_1 = arith.constant 0 : i32
    return %c0_i32, %c0_i32_0 : i32, i32
  }
  func.func @transform_3(%arg0: i32) -> (i32, i32) {
    %c0_i32 = arith.constant 0 : i32
    %c0_i32_0 = arith.constant 0 : i32
    %c0_i32_1 = arith.constant 0 : i32
    return %c0_i32, %c0_i32_0 : i32, i32
  }
  func.func @transform_4(%arg0: i32) -> (i32, i32) {
    %c0_i32 = arith.constant 0 : i32
    %c0_i32_0 = arith.constant 0 : i32
    return %arg0, %c0_i32 : i32, i32
  }
}

</mosaic_0001>

<bundles_post_ra>
// kernel: tpu_custom_call.1
= control target key start
LH: loop header
LB: loop body
LE: loop exit
PB: predicated region body
PF: predicated region fallthrough
CT: control target
= control target key end

     0   :  { %9 = vsyncpa [#allocation3], 0  ;;  %s8212_s0 = inlined_call_operand.vmem [shape: s32[2,1], index: 0, kind: input, shape index: {}]   ;;  %s8213_s1 = inlined_call_operand.hbm [shape: f32[1,2560], index: 1, kind: input, shape index: {}]   ;;  %s8214_s2 = inlined_call_operand.hbm [shape: f32[16,2048], index: 2, kind: input, shape index: {}]   ;;  %s8215_s3 = inlined_call_operand.hbm [shape: f32[1,34816], index: 3, kind: input, shape index: {}]   ;;  %s8216_s4 = inlined_call_operand.hbm [shape: f32[2,39424], index: 4, kind: output, shape index: {}]  }
   0x1   :  { %10 = vsyncpa [#allocation6], 0 }
   0x2   :  { %11 = vsyncpa [#allocation4], 0  ;;  %s4666_s15 = smov [#allocation5]   ;;  %s4572_s19 = scalar_lea.hbm %s8214_s2, 4096 }
   0x3   :  { %s29_s16 = sshll.u32 %s4666_s15, 4  ;;  %p4573_p0 = scmp.ne.s32.totalorder %s8214_s2, %s4572_s19  ;;  %s30_s16 = int_to_ptr.vmem [resolvable:$true] %s29_s16 }
   0x4   :  { %p4576_p1 = scmp.lt.u32.totalorder %s4572_s19, %s8214_s2 }
   0x6   :  { %p4578_p2 = pnand %p4576_p1, %p4573_p0 }
   0x8   :  { %4581 = shalt.err (!%p4578_p2)
}
   0x9   :  { %s4582_s24 = scalar_lea.vmem %s30_s16, 4096  ;;  %p4587_p4 = scmp.lt.s32.totalorder %s30_s16, %s30_s16 }
   0xa   :  { %p4583_p3 = scmp.ne.s32.totalorder %s30_s16, %s4582_s24  ;;  %p4588_p5 = scmp.lt.s32.totalorder %s4582_s24, %s4582_s24 }
   0xc   :  { %p4589_p6 = por %p4588_p5, %p4587_p4 }
   0xe   :  { %p4590_p7 = pnand %p4589_p6, %p4583_p3 }
  0x10   :  { %4593 = shalt.err (!%p4590_p7)
}
  0x11   :  { %s4667_s25 = smov 2048   ;;  %s4668_s26 = smov 128  }
  0x12   :  { %35 = dma.hbm_to_vmem [thread:$0]  %s8214_s2, 4096, %s30_s16, [#allocation6], %s4667_s25, %s4667_s25, %s4668_s26  }
  0x13   :  { %s4669_s29 = smov [#allocation2]   ;;  %s4670_s5 = smov [#allocation7]  }
  0x14   :  { %s20_s30 = sshll.u32 %s4669_s29, 4  ;;  %s42_s6 = sshll.u32 %s4670_s5, 4  ;;  %s21_s30 = int_to_ptr.vmem [resolvable:$true] %s20_s30  ;;  %s43_s6 = int_to_ptr.vmem [resolvable:$true] %s42_s6 }
  0x15   :  { %s4594_s9 = scalar_lea.hbm %s8213_s1, 320 }
  0x16   :  { %p4595_p8 = scmp.ne.s32.totalorder %s8213_s1, %s4594_s9  ;;  %p4598_p9 = scmp.lt.u32.totalorder %s4594_s9, %s8213_s1 }
  0x18   :  { %p4600_p10 = pnand %p4598_p9, %p4595_p8 }
  0x1a   :  { %4603 = shalt.err (!%p4600_p10)
}
  0x1b   :  { %s4604_s2 = scalar_lea.vmem %s21_s30, 320  ;;  %p4609_p12 = scmp.lt.s32.totalorder %s21_s30, %s21_s30 }
  0x1c   :  { %p4605_p11 = scmp.ne.s32.totalorder %s21_s30, %s4604_s2  ;;  %p4610_p13 = scmp.lt.s32.totalorder %s4604_s2, %s4604_s2 }
  0x1e   :  { %p4611_p0 = por %p4610_p13, %p4609_p12 }
  0x20   :  { %p4612_p1 = pnand %p4611_p0, %p4605_p11 }
  0x22   :  { %4615 = shalt.err (!%p4612_p1)
}
  0x23   :  { %23 = dma.hbm_to_vmem [thread:$0]  %s8213_s1, 320, %s21_s30, [#allocation3]  }
  0x24   :  { %s4616_s18 = scalar_lea.hbm %s8215_s3, 4352 }
  0x25   :  { %p4617_p2 = scmp.ne.s32.totalorder %s8215_s3, %s4616_s18  ;;  %p4620_p3 = scmp.lt.u32.totalorder %s4616_s18, %s8215_s3 }
  0x27   :  { %p4622_p4 = pnand %p4620_p3, %p4617_p2 }
  0x29   :  { %4625 = shalt.err (!%p4622_p4)
}
  0x2a   :  { %s4626_s23 = scalar_lea.vmem %s43_s6, 4352  ;;  %p4631_p6 = scmp.lt.s32.totalorder %s43_s6, %s43_s6 }
  0x2b   :  { %p4627_p5 = scmp.ne.s32.totalorder %s43_s6, %s4626_s23  ;;  %p4632_p7 = scmp.lt.s32.totalorder %s4626_s23, %s4626_s23 }
  0x2d   :  { %p4633_p8 = por %p4632_p7, %p4631_p6 }
  0x2f   :  { %p4634_p9 = pnand %p4633_p8, %p4627_p5 }
  0x31   :  { %4637 = shalt.err (!%p4634_p9)
}
  0x32   :  { %45 = dma.hbm_to_vmem [thread:$0]  %s8215_s3, 4352, %s43_s6, [#allocation6]  }
  0x33   :  { %4660 = dma.done.wait [#allocation3], 320  }
  0x34   :  { %4661 = vsyncadd [#allocation3], 4294966976 }
  0x35   :  { %4662 = dma.done.wait [#allocation6], 8448  }
  0x36   :  { %4663 = vsyncadd [#allocation6], 4294958848  ;;  %v4671_v0 = vmov 0   ;;  %v61_v1 = vlaneseq  ;;  %v4742_v3 = vld [vmem:[%s8212_s0] sm:$0x3]  ;;  %s4673_s0 = smov [#allocation8]  }
  0x37   :  { %4571 = vset.pattern.permute.xlu1 %v4671_v0  ;;  %4570 = vset.pattern.permute.xlu0 %v4671_v0  ;;  %vm2998_vm0 = vcmp.eq.s32.totalorder %v4742_v3, 3  ;;  %vm2774_vm1 = vcmp.eq.s32.totalorder %v4742_v3, 1  ;;  %vm3110_vm2 = vcmp.eq.s32.totalorder %v4742_v3, 4  ;;  %vm2886_vm3 = vcmp.eq.s32.totalorder %v4742_v3, 2  ;;  %s4552_s3 = sshll.u32 %s4673_s0, 4  ;;  %s4553_s3 = int_to_ptr.vmem [resolvable:$true] %s4552_s3 }
  0x38   :  { %v4737_v2 = vshrl.u32 %v61_v1, 7  ;;  %v3007_v4 = vsel %vm2998_vm0, 1, %v4671_v0  ;;  %v2783_v5 = vsel %vm2774_vm1, 1, %v4671_v0  ;;  %v3119_v6 = vsel %vm3110_vm2, 1, %v4671_v0  ;;  %s4638_s27 = scalar_lea.vmem %s4553_s3, 9856  ;;  %p4643_p11 = scmp.lt.s32.totalorder %s4553_s3, %s4553_s3 }
  0x39   :  { %3009 = vperm.xlu1 %4571, %v3007_v4   ;;  %2785 = vperm.xlu0 %4570, %v2783_v5   ;;  %vm3334_vm4 = vcmp.eq.s32.totalorder %v4742_v3, 6  ;;  %v2895_v8 = vsel %vm2886_vm3, 1, %v4671_v0  ;;  %vm3222_vm5 = vcmp.eq.s32.totalorder %v4742_v3, 5  ;;  %vm3558_vm6 = vcmp.eq.s32.totalorder %v4742_v3, 8  ;;  %p4639_p10 = scmp.ne.s32.totalorder %s4553_s3, %s4638_s27  ;;  %p4644_p12 = scmp.lt.s32.totalorder %s4638_s27, %s4638_s27 }
  0x3a   :  { %v4753_v7 = vsub.s32 0, %v4737_v2  ;;  %vm3446_vm7 = vcmp.eq.s32.totalorder %v4742_v3, 7  ;;  %vm3782_vm8 = vcmp.eq.s32.totalorder %v4742_v3, 10  ;;  %vm3670_vm9 = vcmp.eq.s32.totalorder %v4742_v3, 9 }
  0x3b   :  { %vm4006_vm10 = vcmp.eq.s32.totalorder %v4742_v3, 12  ;;  %vm3894_vm11 = vcmp.eq.s32.totalorder %v4742_v3, 11  ;;  %v3343_v9 = vsel %vm3334_vm4, 1, %v4671_v0  ;;  %v4765_v10 = vsub.s32 1, %v4737_v2  ;;  %p4645_p13 = por %p4644_p12, %p4643_p11 }
  0x3c   :  { %v4768_v11 = vsub.s32 2, %v4737_v2  ;;  %v4771_v12 = vsub.s32 3, %v4737_v2  ;;  %v3231_v13 = vsel %vm3222_vm5, 1, %v4671_v0  ;;  %v3567_v14 = vsel %vm3558_vm6, 1, %v4671_v0 }
  0x3d   :  { %3121 = vperm.xlu1 %4571, %v3119_v6   ;;  %2897 = vperm.xlu0 %4570, %v2895_v8   ;;  %v3455_v15 = vsel %vm3446_vm7, 1, %v4671_v0  ;;  %vm4230_vm12 = vcmp.eq.s32.totalorder %v4742_v3, 14  ;;  %v3791_v16 = vsel %vm3782_vm8, 1, %v4671_v0  ;;  %v3679_v17 = vsel %vm3670_vm9, 1, %v4671_v0  ;;  %p4646_p0 = pnand %p4645_p13, %p4639_p10 }
  0x3e   :  { %v4780_v18 = vsel %vm4006_vm10, 1, %v4671_v0  ;;  %v4783_v19 = vsel %vm3894_vm11, 1, %v4671_v0  ;;  %v4786_v20 = vsel %vm4230_vm12, 1, %v4671_v0  ;;  %vm4118_vm13 = vcmp.eq.s32.totalorder %v4742_v3, 13 }
  0x3f   :  { %v4790_v21 = vsub.s32 4, %v4737_v2  ;;  %v2685_v22 = vld [vmem:[#allocation5] ss:$8 sm:$0xf]  ;;  %v4793_v25 = vsub.s32 5, %v4737_v2  ;;  %v4796_v26 = vsub.s32 6, %v4737_v2 }
  0x40   :  { %v2686_v23 = vld [vmem:[#allocation5] ss:$8 sm:$0xf0]  ;;  %v4799_v27 = vsub.s32 7, %v4737_v2  ;;  %vm4342_vm14 = vcmp.eq.s32.totalorder %v4742_v3, 15  ;;  %v4127_v62 = vsel %vm4118_vm13, 1, %v4671_v0 }
  0x41   :  { %v2689_v24 = vld [vmem:[#allocation5 + $0x40] ss:$8 sm:$0xf]  ;;  %3345 = vperm.xlu1 %4571, %v3343_v9   ;;  %3233 = vperm.xlu0 %4570, %v3231_v13   ;;  %v4801_v28 = vor.u32 %v2686_v23, %v2685_v22  ;;  %v2776_v31 = vld [vmem:[#allocation5 + $0x1] ss:$8 sm:$0xf] }
  0x42   :  { %v2690_v29 = vld [vmem:[#allocation5 + $0x40] ss:$8 sm:$0xf0]  ;;  %v2777_v32 = vld [vmem:[#allocation5 + $0x1] ss:$8 sm:$0xf0] }
  0x43   :  { %v4804_v30 = vor.u32 %v2690_v29, %v2689_v24  ;;  %v2780_v33 = vld [vmem:[#allocation5 + $0x41] ss:$8 sm:$0xf]  ;;  %v2888_v35 = vld [vmem:[#allocation5 + $0x2] ss:$8 sm:$0xf]  ;;  %v4834_v56 = vor.u32 %v2777_v32, %v2776_v31 }
  0x44   :  { %v2781_v34 = vld [vmem:[#allocation5 + $0x41] ss:$8 sm:$0xf0]  ;;  %v2889_v40 = vld [vmem:[#allocation5 + $0x2] ss:$8 sm:$0xf0] }
  0x45   :  { %v2892_v41 = vld [vmem:[#allocation5 + $0x42] ss:$8 sm:$0xf]  ;;  %3569 = vperm.xlu1 %4571, %v3567_v14   ;;  %3457 = vperm.xlu0 %4570, %v3455_v15   ;;  %v3000_v46 = vld [vmem:[#allocation5 + $0x3] ss:$8 sm:$0xf]  ;;  %v4840_v60 = vor.u32 %v2781_v34, %v2780_v33  ;;  %v4842_v61 = vor.u32 %v2889_v40, %v2888_v35 }
  0x46   :  { %v2893_v45 = vld [vmem:[#allocation5 + $0x42] ss:$8 sm:$0xf0]  ;;  %v3001_v51 = vld [vmem:[#allocation5 + $0x3] ss:$8 sm:$0xf0] }
  0x47   :  { %v3004_v52 = vld [vmem:[#allocation5 + $0x43] ss:$8 sm:$0xf]  ;;  %v4847_v63 = vor.u32 %v2893_v45, %v2892_v41  ;;  %v4849_v1 = vor.u32 %v3001_v51, %v3000_v46  ;;  %v4351_v29 = vsel %vm4342_vm14, 1, %v4671_v0  ;;  %v4672_v14 = vmov 1983009808  }
  0x48   :  { %v3005_v57 = vld [vmem:[#allocation5 + $0x43] ss:$8 sm:$0xf0]  ;;  %v3113_v35 = vld [vmem:[#allocation5 + $0x4] ss:$8 sm:$0xf0]  ;;  %v144_v43 = vunpack.c.l.s4 %v4672_v14 }
  0x49   :  { %3793 = vperm.xlu1 %4571, %v3791_v16   ;;  %3681 = vperm.xlu0 %4570, %v3679_v17   ;;  %v4851_v4 = vor.u32 %v3005_v57, %v3004_v52  ;;  %v3112_v57 = vld [vmem:[#allocation5 + $0x4] ss:$8 sm:$0xf]  ;;  %v3224_v41 = vld [vmem:[#allocation5 + $0x5] ss:$8 sm:$0xf] }
  0x4a   :  { %v3116_v40 = vld [vmem:[#allocation5 + $0x44] ss:$8 sm:$0xf]  ;;  %v3225_v0 = vld [vmem:[#allocation5 + $0x5] ss:$8 sm:$0xf0]  ;;  %v4949_v33 = vor.u32 %v3113_v35, %v3112_v57  ;;  %v145_v42 = vunpack.c.0.s8 %v144_v43 }
  0x4b   :  { %v3117_v3 = vld [vmem:[#allocation5 + $0x44] ss:$8 sm:$0xf0]  ;;  %v3336_v34 = vld [vmem:[#allocation5 + $0x6] ss:$8 sm:$0xf]  ;;  %v4961_v51 = vor.u32 %v3225_v0, %v3224_v41 }
  0x4c   :  { %v3337_v59 = vld [vmem:[#allocation5 + $0x6] ss:$8 sm:$0xf0]  ;;  %v3448_v46 = vld [vmem:[#allocation5 + $0x7] ss:$8 sm:$0xf] }
  0x4d   :  { %4017 = vperm.xlu1 %4571, %v4780_v18   ;;  %3905 = vperm.xlu0 %4570, %v4783_v19   ;;  %v3228_v19 = vld [vmem:[#allocation5 + $0x45] ss:$8 sm:$0xf]  ;;  %v4965_v35 = vor.u32 %v3337_v59, %v3336_v34  ;;  %v3341_v59 = vld [vmem:[#allocation5 + $0x46] ss:$8 sm:$0xf0] }
  0x4e   :  { %v3229_v18 = vld [vmem:[#allocation5 + $0x45] ss:$8 sm:$0xf0]  ;;  %v3452_v57 = vld [vmem:[#allocation5 + $0x47] ss:$8 sm:$0xf] }
  0x4f   :  { %v4963_v58 = vor.u32 %v3229_v18, %v3228_v19  ;;  %v3449_v19 = vld [vmem:[#allocation5 + $0x7] ss:$8 sm:$0xf0]  ;;  %v3560_v45 = vld [vmem:[#allocation5 + $0x80] ss:$8 sm:$0xf] }
  0x50   :  { %v3453_v52 = vld [vmem:[#allocation5 + $0x47] ss:$8 sm:$0xf0]  ;;  %v3565_v32 = vld [vmem:[#allocation5 + $0xc0] ss:$8 sm:$0xf0]  ;;  %v5059_v50 = vor.u32 %v3449_v19, %v3448_v46 }
  0x51   :  { %4241 = vperm.xlu1 %4571, %v4786_v20   ;;  %4129 = vperm.xlu0 %4570, %v4127_v62   ;;  %v4957_v62 = vor.u32 %v3117_v3, %v3116_v40  ;;  %v3340_v3 = vld [vmem:[#allocation5 + $0x46] ss:$8 sm:$0xf]  ;;  %v3564_v20 = vld [vmem:[#allocation5 + $0xc0] ss:$8 sm:$0xf]  ;;  %v5061_v40 = vor.u32 %v3453_v52, %v3452_v57 }
  0x52   :  { %v5029_v18 = vor.u32 %v3341_v59, %v3340_v3  ;;  %v3672_v31 = vld [vmem:[#allocation5 + $0x81] ss:$8 sm:$0xf]  ;;  %v3784_v53 = vld [vmem:[#allocation5 + $0x82] ss:$8 sm:$0xf]  ;;  %v5069_v59 = vor.u32 %v3565_v32, %v3564_v20 }
  0x53   :  { %v3673_v0 = vld [vmem:[#allocation5 + $0x81] ss:$8 sm:$0xf0]  ;;  %v3785_v23 = vld [vmem:[#allocation5 + $0x82] ss:$8 sm:$0xf0] }
  0x54   :  { %v3676_v54 = vld [vmem:[#allocation5 + $0xc1] ss:$8 sm:$0xf]  ;;  %v5073_v49 = vor.u32 %v3673_v0, %v3672_v31  ;;  %v5077_v46 = vor.u32 %v3785_v23, %v3784_v53  ;;  %v3896_v32 = vld [vmem:[#allocation5 + $0x83] ss:$8 sm:$0xf] }
  0x55   :  { %4353 = vperm.xlu0 %4570, %v4351_v29   ;;  %v3561_v29 = vld [vmem:[#allocation5 + $0x80] ss:$8 sm:$0xf0]  ;;  %v3677_v24 = vld [vmem:[#allocation5 + $0xc1] ss:$8 sm:$0xf0] }
  0x56   :  { %v5067_v22 = vor.u32 %v3561_v29, %v3560_v45  ;;  %v5075_v55 = vor.u32 %v3677_v24, %v3676_v54  ;;  %8255 = vst [vmem:[#allocation12_spill] sm:$0xff] %v5077_v46  ;;  %v3788_v54 = vld [vmem:[#allocation5 + $0xc2] ss:$8 sm:$0xf] }
  0x57   :  { %v3789_v24 = vld [vmem:[#allocation5 + $0xc2] ss:$8 sm:$0xf0]  ;;  %v3897_v29 = vld [vmem:[#allocation5 + $0x83] ss:$8 sm:$0xf0] }
  0x58   :  { %v3900_v45 = vld [vmem:[#allocation5 + $0xc3] ss:$8 sm:$0xf]  ;;  %v5173_v23 = vor.u32 %v3789_v24, %v3788_v54  ;;  %v4008_v52 = vld [vmem:[#allocation5 + $0x84] ss:$8 sm:$0xf]  ;;  %v5203_v47 = vor.u32 %v3897_v29, %v3896_v32 }
  0x59   :  { %v3901_v57 = vld [vmem:[#allocation5 + $0xc3] ss:$8 sm:$0xf0]  ;;  %v4009_v31 = vld [vmem:[#allocation5 + $0x84] ss:$8 sm:$0xf0] }
  0x5a   :  { %8256 = vst [vmem:[#allocation13_spill] sm:$0xff] %v5173_v23  ;;  %v4012_v19 = vld [vmem:[#allocation5 + $0xc4] ss:$8 sm:$0xf]  ;;  %8257 = vst [vmem:[#allocation14_spill] sm:$0xff] %v5203_v47  ;;  %v5205_v3 = vor.u32 %v3901_v57, %v3900_v45  ;;  %v5211_v15 = vor.u32 %v4009_v31, %v4008_v52 }
  0x5b   :  { %v4013_v41 = vld [vmem:[#allocation5 + $0xc4] ss:$8 sm:$0xf0]  ;;  %v4120_v53 = vld [vmem:[#allocation5 + $0x85] ss:$8 sm:$0xf] }
  0x5c   :  { %v4121_v17 = vld [vmem:[#allocation5 + $0x85] ss:$8 sm:$0xf0]  ;;  %8258 = vst [vmem:[#allocation15_spill] sm:$0xff] %v5205_v3  ;;  %8259 = vst [vmem:[#allocation16_spill] sm:$0xff] %v5211_v15  ;;  %v5213_v24 = vor.u32 %v4013_v41, %v4012_v19 }
  0x5d   :  { %v4124_v48 = vld [vmem:[#allocation5 + $0xc5] ss:$8 sm:$0xf]  ;;  %v5217_v44 = vor.u32 %v4121_v17, %v4120_v53  ;;  %v4232_v52 = vld [vmem:[#allocation5 + $0x86] ss:$8 sm:$0xf] }
  0x5e   :  { %v4125_v16 = vld [vmem:[#allocation5 + $0xc5] ss:$8 sm:$0xf0]  ;;  %8260 = vst [vmem:[#allocation17_spill] sm:$0xff] %v5213_v24 }
  0x5f   :  { %8261 = vst [vmem:[#allocation18_spill] sm:$0xff] %v5217_v44  ;;  %v5219_v34 = vor.u32 %v4125_v16, %v4124_v48  ;;  %v4233_v16 = vld [vmem:[#allocation5 + $0x86] ss:$8 sm:$0xf0] }
  0x60   :  { %v4236_v41 = vld [vmem:[#allocation5 + $0xc6] ss:$8 sm:$0xf]  ;;  %v4344_v45 = vld [vmem:[#allocation5 + $0x87] ss:$8 sm:$0xf]  ;;  %v5315_v31 = vor.u32 %v4233_v16, %v4232_v52 }
  0x61   :  { %8262 = vst [vmem:[#allocation19_spill] sm:$0xff] %v5219_v34  ;;  %v4237_v32 = vld [vmem:[#allocation5 + $0xc6] ss:$8 sm:$0xf0] }
  0x62   :  { %v4345_v57 = vld [vmem:[#allocation5 + $0x87] ss:$8 sm:$0xf0]  ;;  %8263 = vst [vmem:[#allocation20_spill] sm:$0xff] %v5315_v31  ;;  %v5319_v13 = vor.u32 %v4237_v32, %v4236_v41 }
  0x63   :  { %v4348_v20 = vld [vmem:[#allocation5 + $0xc7] ss:$8 sm:$0xf]  ;;  %v5321_v29 = vor.u32 %v4345_v57, %v4344_v45 }
  0x64   :  { %v4349_v54 = vld [vmem:[#allocation5 + $0xc7] ss:$8 sm:$0xf0]  ;;  %8264 = vst [vmem:[#allocation21_spill] sm:$0xff] %v5319_v13 }
  0x65   :  { %v5309_v0 = vld [vmem:[#allocation2] sm:$0xff]  ;;  %8265 = vst [vmem:[#allocation22_spill] sm:$0xff] %v5321_v29  ;;  %v5323_v19 = vor.u32 %v4349_v54, %v4348_v20  ;;  %v5340_v54 = vsub.s32 %v145_v42, %v4737_v2  ;;  %v56_v57 = vld [vmem:[#allocation2 + $0x8] sm:$0xff]  ;;  %v57_v20 = vld [vmem:[#allocation2 + $0x10] sm:$0xf] }
  0x66   :  { %v64_v17 = vrot.slane %v5309_v0, %v4753_v7  ;;  %v68_v48 = vrot.slane %v5309_v0, %v4765_v10  ;;  %v72_v14 = vrot.slane %v5309_v0, %v4768_v11  ;;  %v76_v32 = vrot.slane %v5309_v0, %v4771_v12 }
  0x67   :  { %v80_v43 = vrot.slane %v5309_v0, %v4790_v21  ;;  %v84_v2 = vrot.slane %v5309_v0, %v4793_v25  ;;  %v88_v42 = vrot.slane %v5309_v0, %v4796_v26  ;;  %v92_v45 = vrot.slane %v5309_v0, %v4799_v27 }
  0x68   :  { %v96_v41 = vrot.slane %v56_v57, %v4753_v7  ;;  %v100_v16 = vrot.slane %v56_v57, %v4765_v10  ;;  %v104_v52 = vrot.slane %v56_v57, %v4768_v11  ;;  %v108_v53 = vrot.slane %v56_v57, %v4771_v12 }
  0x69   :  { %v112_v9 = vrot.slane %v56_v57, %v4790_v21  ;;  %v116_v39 = vrot.slane %v56_v57, %v4793_v25  ;;  %v120_v8 = vrot.slane %v56_v57, %v4796_v26  ;;  %v124_v38 = vrot.slane %v56_v57, %v4799_v27 }
  0x6a   :  { %v128_v6 = vrot.slane %v57_v20, %v4753_v7  ;;  %v132_v0 = vrot.slane %v57_v20, %v4765_v10  ;;  %v136_v37 = vrot.slane %v57_v20, %v4768_v11  ;;  %v140_v5 = vrot.slane %v57_v20, %v4771_v12 }
  0x6b   :  { %v141_v36 = vcombine.low %v64_v17, %v68_v48  ;;  %v142_v29 = vcombine.low %v72_v14, %v76_v32  ;;  %v158_v13 = vcombine.low %v80_v43, %v84_v2  ;;  %v159_v31 = vcombine.low %v88_v42, %v92_v45  ;;  %v5422_v32 = vld [vmem:[#allocation7] sm:$0xff]  ;;  %v5454_v45 = vld [vmem:[#allocation7 + $0x18] sm:$0xff]  ;;  %v5580_v42 = vld [vmem:[#allocation7 + $0x50] sm:$0xff] }
  0x6c   :  { %v175_v34 = vcombine.low %v96_v41, %v100_v16  ;;  %v176_v24 = vcombine.low %v104_v52, %v108_v53  ;;  %v192_v15 = vcombine.low %v112_v9, %v116_v39  ;;  %v193_v3 = vcombine.low %v120_v8, %v124_v38  ;;  %8268 = vst [vmem:[#allocation25_spill] sm:$0xff] %v5580_v42  ;;  %v5616_v16 = vld [vmem:[#allocation7 + $0x60] sm:$0xff]  ;;  %v5634_v2 = vld [vmem:[#allocation7 + $0x68] sm:$0xff]  ;;  %v5652_v43 = vld [vmem:[#allocation7 + $0x70] sm:$0xff] }
  0x6d   :  { %v149_v44 = vrot.slane %v141_v36, %v5340_v54  ;;  %v156_v57 = vrot.slane %v142_v29, %v5340_v54  ;;  %v166_v47 = vrot.slane %v158_v13, %v5340_v54  ;;  %v173_v23 = vrot.slane %v159_v31, %v5340_v54  ;;  %v5429_v31 = vld [vmem:[#allocation7 + $0x8] sm:$0xff]  ;;  %8270 = vst [vmem:[#allocation27_spill] sm:$0xff] %v5616_v16  ;;  %v5670_v41 = vld [vmem:[#allocation7 + $0x78] sm:$0xff]  ;;  %v5688_v29 = vld [vmem:[#allocation7 + $0x80] sm:$0xff] }
  0x6e   :  { %v183_v46 = vrot.slane %v175_v34, %v5340_v54  ;;  %v190_v20 = vrot.slane %v176_v24, %v5340_v54  ;;  %v200_v17 = vrot.slane %v192_v15, %v5340_v54  ;;  %v207_v48 = vrot.slane %v193_v3, %v5340_v54  ;;  %8271 = vst [vmem:[#allocation28_spill] sm:$0xff] %v5634_v2 }
  0x6f   :  { %v209_v14 = vcombine.low %v128_v6, %v132_v0  ;;  %v157_v38 = vcombine.low %v149_v44, %v156_v57  ;;  %v174_v39 = vcombine.low %v166_v47, %v173_v23  ;;  %v210_v8 = vcombine.low %v136_v37, %v140_v5  ;;  %v5438_v47 = vld [vmem:[#allocation7 + $0x10] sm:$0xff]  ;;  %v5544_v57 = vld [vmem:[#allocation7 + $0x40] sm:$0xff]  ;;  %v5598_v0 = vld [vmem:[#allocation7 + $0x58] sm:$0xff]  ;;  %8272 = vst [vmem:[#allocation29_spill] sm:$0xff] %v5652_v43 }
  0x70   :  { %v191_v13 = vcombine.low %v183_v46, %v190_v20  ;;  %v208_v34 = vcombine.low %v200_v17, %v207_v48  ;;  %v5472_v48 = vld [vmem:[#allocation7 + $0x20] sm:$0xff]  ;;  %v5508_v17 = vld [vmem:[#allocation7 + $0x30] sm:$0xff]  ;;  %8266 = vst [vmem:[#allocation23_spill] sm:$0xff] %v5544_v57  ;;  %v5562_v20 = vld [vmem:[#allocation7 + $0x48] sm:$0xff]  ;;  %v8278_v5 = vrot.slane %v4801_v28, %v4768_v11  ;;  %v8280_v3 = vrot.slane %v4801_v28, %v4771_v12 }
  0x71   :  { %v217_v24 = vrot.slane %v209_v14, %v5340_v54  ;;  %v224_v15 = vrot.slane %v210_v8, %v5340_v54  ;;  %231 = vst [vmem:[#allocation8] sm:$0xff] %v157_v38  ;;  %232 = vst [vmem:[#allocation8 + $0x8] sm:$0xff] %v174_v39  ;;  %v5526_v14 = vld [vmem:[#allocation7 + $0x38] sm:$0xff]  ;;  %v8275_v38 = vrot.slane %v4834_v56, %v4753_v7 }
  0x72   :  { %233 = vst [vmem:[#allocation8 + $0x10] sm:$0xff] %v191_v13  ;;  %234 = vst [vmem:[#allocation8 + $0x18] sm:$0xff] %v208_v34  ;;  %v8277_v8 = vrot.slane %v4834_v56, %v4765_v10  ;;  %v8282_v46 = vrot.slane %v4801_v28, %v4790_v21  ;;  %v8283_v23 = vrot.slane %v4834_v56, %v4790_v21 }
  0x73   :  { %v225_v53 = vcombine.low %v217_v24, %v224_v15  ;;  %8267 = vst [vmem:[#allocation24_spill] sm:$0xff] %v5562_v20  ;;  %8269 = vst [vmem:[#allocation26_spill] sm:$0xff] %v5598_v0  ;;  %v8274_v15 = vrot.slane %v4801_v28, %v4753_v7  ;;  %v8276_v24 = vrot.slane %v4801_v28, %v4765_v10 }
  0x74   :  { %8273 = vst [vmem:[#allocation30_spill] sm:$0xff] %v5670_v41  ;;  %v8284_v37 = vrot.slane %v4801_v28, %v4793_v25  ;;  %v8286_v6 = vrot.slane %v4801_v28, %v4796_v26  ;;  %v8288_v9 = vrot.slane %v4801_v28, %v4799_v27  ;;  %v8290_v36 = vrot.slane %v4804_v30, %v4753_v7 }
  0x75   :  { %235 = vst [vmem:[#allocation8 + $0x20] sm:$0xff] %v225_v53  ;;  %v5490_v53 = vld [vmem:[#allocation7 + $0x28] sm:$0xff]  ;;  %v8292_v41 = vrot.slane %v4804_v30, %v4765_v10  ;;  %v8300_v0 = vrot.slane %v4804_v30, %v4793_v25  ;;  %v8302_v42 = vrot.slane %v4804_v30, %v4796_v26  ;;  %v8304_v20 = vrot.slane %v4804_v30, %v4799_v27 }
  0x76   :  { %v8307_v57 = vrot.slane %v4842_v61, %v4765_v10 }
  0xb8   :  { %v5714_v52 = vpop.permute.xlu1 %3009  ;;  %v2786_v34 = vpop.permute.xlu0 %2785 }
  0xb9   :  { %vm2787_vm15 = vcmp.eq.s32.totalorder %v2786_v34, 1  ;;  %vm3011_vm0 = vcmp.eq.s32.totalorder %v5714_v52, 1 }
  0xba   :  { %v2870_v39 = vsel %vm2787_vm15, %v8275_v38, %v8274_v15  ;;  %v2871_v13 = vsel %vm2787_vm15, %v8277_v8, %v8276_v24  ;;  %v8279_v38 = vrot.slane %v4834_v56, %v4768_v11  ;;  %v8281_v8 = vrot.slane %v4834_v56, %v4771_v12 }
  0xbb   :  { %v2874_v44 = vsel %vm2787_vm15, %v8283_v23, %v8282_v46  ;;  %v8289_v46 = vrot.slane %v4834_v56, %v4799_v27 }
  0xbc   :  { %v2872_v15 = vsel %vm2787_vm15, %v8279_v38, %v8278_v5  ;;  %v2873_v24 = vsel %vm2787_vm15, %v8281_v8, %v8280_v3  ;;  %v8285_v5 = vrot.slane %v4834_v56, %v4793_v25  ;;  %v8287_v3 = vrot.slane %v4834_v56, %v4796_v26  ;;  %v2898_v56 = vpop.permute.xlu0 %2897 }
  0xbd   :  { %v2877_v23 = vsel %vm2787_vm15, %v8289_v46, %v8288_v9  ;;  %v8294_v9 = vrot.slane %v4804_v30, %v4768_v11  ;;  %v8295_v46 = vrot.slane %v4840_v60, %v4768_v11  ;;  %vm2899_vm2 = vcmp.eq.s32.totalorder %v2898_v56, 1 }
  0xbe   :  { %v2875_v38 = vsel %vm2787_vm15, %v8285_v5, %v8284_v37  ;;  %v2876_v8 = vsel %vm2787_vm15, %v8287_v3, %v8286_v6  ;;  %v8291_v37 = vrot.slane %v4840_v60, %v4753_v7  ;;  %v8293_v6 = vrot.slane %v4840_v60, %v4765_v10  ;;  %v5805_v3 = vpop.permute.xlu1 %3121 }
  0xbf   :  { %v2880_v43 = vsel %vm2787_vm15, %v8295_v46, %v8294_v9  ;;  %v8301_v9 = vrot.slane %v4840_v60, %v4793_v25  ;;  %vm3123_vm1 = vcmp.eq.s32.totalorder %v5805_v3, 1  ;;  %v8325_v56 = vrot.slane %v4849_v1, %v4771_v12 }
  0xc0   :  { %v2878_v5 = vsel %vm2787_vm15, %v8291_v37, %v8290_v36  ;;  %v2879_v28 = vsel %vm2787_vm15, %v8293_v6, %v8292_v41  ;;  %v8296_v36 = vrot.slane %v4804_v30, %v4771_v12  ;;  %v8297_v37 = vrot.slane %v4840_v60, %v4771_v12 }
  0xc1   :  { %v8298_v41 = vrot.slane %v4804_v30, %v4790_v21  ;;  %v8299_v6 = vrot.slane %v4840_v60, %v4790_v21  ;;  %v2883_v46 = vsel %vm2787_vm15, %v8301_v9, %v8300_v0  ;;  %v8306_v0 = vrot.slane %v4842_v61, %v4753_v7 }
  0xc2   :  { %v2881_v2 = vsel %vm2787_vm15, %v8297_v37, %v8296_v36  ;;  %v8303_v36 = vrot.slane %v4840_v60, %v4796_v26  ;;  %v8312_v30 = vrot.slane %v4842_v61, %v4796_v26 }
  0xc3   :  { %v2882_v16 = vsel %vm2787_vm15, %v8299_v6, %v8298_v41  ;;  %v8305_v41 = vrot.slane %v4840_v60, %v4799_v27  ;;  %v2982_v9 = vsel %vm2899_vm2, %v8306_v0, %v2870_v39  ;;  %v847_v60 = vrot.slane %v5688_v29, %v4799_v27 }
  0xc4   :  { %v2884_v37 = vsel %vm2787_vm15, %v8303_v36, %v8302_v42  ;;  %v2983_v42 = vsel %vm2899_vm2, %v8307_v57, %v2871_v13  ;;  %v8309_v36 = vrot.slane %v4842_v61, %v4771_v12  ;;  %v8311_v13 = vrot.slane %v4842_v61, %v4793_v25 }
  0xc5   :  { %v2885_v6 = vsel %vm2787_vm15, %v8305_v41, %v8304_v20  ;;  %v8308_v20 = vrot.slane %v4842_v61, %v4768_v11  ;;  %v8310_v41 = vrot.slane %v4842_v61, %v4790_v21 }
  0xc6   :  { %v2985_v39 = vsel %vm2899_vm2, %v8309_v36, %v2873_v24  ;;  %v2987_v0 = vsel %vm2899_vm2, %v8311_v13, %v2875_v38  ;;  %v8314_v36 = vrot.slane %v4847_v63, %v4753_v7  ;;  %v8316_v13 = vrot.slane %v4847_v63, %v4768_v11 }
  0xc7   :  { %v2984_v34 = vsel %vm2899_vm2, %v8308_v20, %v2872_v15  ;;  %v2986_v57 = vsel %vm2899_vm2, %v8310_v41, %v2874_v44  ;;  %v2988_v15 = vsel %vm2899_vm2, %v8312_v30, %v2876_v8  ;;  %v8313_v20 = vrot.slane %v4842_v61, %v4799_v27 }
  0xc8   :  { %v2990_v44 = vsel %vm2899_vm2, %v8314_v36, %v2878_v5  ;;  %v8315_v41 = vrot.slane %v4847_v63, %v4765_v10  ;;  %v2992_v8 = vsel %vm2899_vm2, %v8316_v13, %v2880_v43  ;;  %v8317_v61 = vrot.slane %v4847_v63, %v4771_v12 }
  0xc9   :  { %v2989_v24 = vsel %vm2899_vm2, %v8313_v20, %v2877_v23  ;;  %v8318_v30 = vrot.slane %v4847_v63, %v4790_v21  ;;  %v8319_v20 = vrot.slane %v4847_v63, %v4793_v25  ;;  %v8320_v36 = vrot.slane %v4847_v63, %v4796_v26 }
  0xca   :  { %v2991_v38 = vsel %vm2899_vm2, %v8315_v41, %v2879_v28  ;;  %v2993_v23 = vsel %vm2899_vm2, %v8317_v61, %v2881_v2  ;;  %v8321_v41 = vrot.slane %v4847_v63, %v4799_v27  ;;  %v8322_v13 = vrot.slane %v4849_v1, %v4753_v7 }
  0xcb   :  { %v2994_v5 = vsel %vm2899_vm2, %v8318_v30, %v2882_v16  ;;  %v2995_v28 = vsel %vm2899_vm2, %v8319_v20, %v2883_v46  ;;  %v2996_v43 = vsel %vm2899_vm2, %v8320_v36, %v2884_v37  ;;  %v8323_v61 = vrot.slane %v4849_v1, %v4765_v10  ;;  %v3234_v30 = vpop.permute.xlu0 %3233 }
  0xcc   :  { %v2997_v2 = vsel %vm2899_vm2, %v8321_v41, %v2885_v6  ;;  %v3094_v16 = vsel %vm3011_vm0, %v8322_v13, %v2982_v9  ;;  %v8324_v37 = vrot.slane %v4849_v1, %v4768_v11  ;;  %v3097_v6 = vsel %vm3011_vm0, %v8325_v56, %v2985_v39  ;;  %v5948_v41 = vpop.permute.xlu1 %3345 }
  0xcd   :  { %v3095_v46 = vsel %vm3011_vm0, %v8323_v61, %v2983_v42  ;;  %v8326_v9 = vrot.slane %v4849_v1, %v4790_v21  ;;  %v8327_v42 = vrot.slane %v4849_v1, %v4793_v25  ;;  %v8329_v13 = vrot.slane %v4849_v1, %v4799_v27 }
  0xce   :  { %v3096_v63 = vsel %vm3011_vm0, %v8324_v37, %v2984_v34  ;;  %v8328_v34 = vrot.slane %v4849_v1, %v4796_v26  ;;  %v8330_v61 = vrot.slane %v4851_v4, %v4753_v7  ;;  %v8331_v37 = vrot.slane %v4851_v4, %v4765_v10 }
  0xcf   :  { %v3098_v20 = vsel %vm3011_vm0, %v8326_v9, %v2986_v57  ;;  %v3099_v36 = vsel %vm3011_vm0, %v8327_v42, %v2987_v0  ;;  %v3101_v57 = vsel %vm3011_vm0, %v8329_v13, %v2989_v24  ;;  %v8333_v24 = vrot.slane %v4851_v4, %v4771_v12 }
  0xd0   :  { %v3100_v39 = vsel %vm3011_vm0, %v8328_v34, %v2988_v15  ;;  %v3102_v0 = vsel %vm3011_vm0, %v8330_v61, %v2990_v44  ;;  %v3103_v56 = vsel %vm3011_vm0, %v8331_v37, %v2991_v38  ;;  %v8332_v15 = vrot.slane %v4851_v4, %v4768_v11 }
  0xd1   :  { %v3105_v9 = vsel %vm3011_vm0, %v8333_v24, %v2993_v23  ;;  %v8334_v44 = vrot.slane %v4851_v4, %v4790_v21  ;;  %v8335_v38 = vrot.slane %v4851_v4, %v4793_v25  ;;  %v8337_v23 = vrot.slane %v4851_v4, %v4799_v27 }
  0xd2   :  { %v3104_v1 = vsel %vm3011_vm0, %v8332_v15, %v2992_v8  ;;  %v8336_v8 = vrot.slane %v4851_v4, %v4796_v26  ;;  %vm3347_vm3 = vcmp.eq.s32.totalorder %v5948_v41, 1  ;;  %v8339_v37 = vrot.slane %v4949_v33, %v4765_v10 }
  0xd3   :  { %v3106_v42 = vsel %vm3011_vm0, %v8334_v44, %v2994_v5  ;;  %v3107_v34 = vsel %vm3011_vm0, %v8335_v38, %v2995_v28  ;;  %v3109_v61 = vsel %vm3011_vm0, %v8337_v23, %v2997_v2  ;;  %v8338_v5 = vrot.slane %v4949_v33, %v4753_v7 }
  0xd4   :  { %v3108_v13 = vsel %vm3011_vm0, %v8336_v8, %v2996_v43  ;;  %v3207_v43 = vsel %vm3123_vm1, %v8339_v37, %v3095_v46  ;;  %v8340_v4 = vrot.slane %v4949_v33, %v4768_v11  ;;  %v8341_v2 = vrot.slane %v4949_v33, %v4771_v12 }
  0xd5   :  { %v3206_v28 = vsel %vm3123_vm1, %v8338_v5, %v3094_v16  ;;  %v8342_v16 = vrot.slane %v4949_v33, %v4790_v21  ;;  %v8343_v46 = vrot.slane %v4949_v33, %v4793_v25  ;;  %v6046_v5 = vpop.permute.xlu0 %3457  ;;  %v8349_v37 = vrot.slane %v4957_v62, %v4771_v12 }
  0xd6   :  { %v3208_v52 = vsel %vm3123_vm1, %v8340_v4, %v3096_v63  ;;  %v3209_v15 = vsel %vm3123_vm1, %v8341_v2, %v3097_v6  ;;  %v8344_v63 = vrot.slane %v4949_v33, %v4796_v26  ;;  %v8345_v6 = vrot.slane %v4949_v33, %v4799_v27 }
  0xd7   :  { %v3210_v24 = vsel %vm3123_vm1, %v8342_v16, %v3098_v20  ;;  %v3211_v44 = vsel %vm3123_vm1, %v8343_v46, %v3099_v36  ;;  %v8346_v20 = vrot.slane %v4957_v62, %v4753_v7  ;;  %v8347_v36 = vrot.slane %v4957_v62, %v4765_v10  ;;  %v6068_v16 = vpop.permute.xlu1 %3569 }
  0xd8   :  { %v3212_v38 = vsel %vm3123_vm1, %v8344_v63, %v3100_v39  ;;  %v3213_v8 = vsel %vm3123_vm1, %v8345_v6, %v3101_v57  ;;  %v8348_v33 = vrot.slane %v4957_v62, %v4768_v11  ;;  %v8350_v4 = vrot.slane %v4957_v62, %v4790_v21 }
  0xd9   :  { %v3214_v23 = vsel %vm3123_vm1, %v8346_v20, %v3102_v0  ;;  %v3215_v39 = vsel %vm3123_vm1, %v8347_v36, %v3103_v56  ;;  %v3217_v0 = vsel %vm3123_vm1, %v8349_v37, %v3105_v9  ;;  %v8351_v56 = vrot.slane %v4957_v62, %v4793_v25 }
  0xda   :  { %v3216_v57 = vsel %vm3123_vm1, %v8348_v33, %v3104_v1  ;;  %v3218_v2 = vsel %vm3123_vm1, %v8350_v4, %v3106_v42  ;;  %v8352_v46 = vrot.slane %v4957_v62, %v4796_v26  ;;  %v8353_v63 = vrot.slane %v4957_v62, %v4799_v27 }
  0xdb   :  { %v3219_v1 = vsel %vm3123_vm1, %v8351_v56, %v3107_v34  ;;  %vm3235_vm4 = vcmp.eq.s32.totalorder %v3234_v30, 1  ;;  %v8354_v6 = vrot.slane %v4961_v51, %v4753_v7  ;;  %v8355_v34 = vrot.slane %v4961_v51, %v4765_v10 }
  0xdc   :  { %v3220_v9 = vsel %vm3123_vm1, %v8352_v46, %v3108_v13  ;;  %v3221_v42 = vsel %vm3123_vm1, %v8353_v63, %v3109_v61  ;;  %v8356_v13 = vrot.slane %v4961_v51, %v4768_v11  ;;  %vm3459_vm5 = vcmp.eq.s32.totalorder %v6046_v5, 1 }
  0xdd   :  { %v3318_v20 = vsel %vm3235_vm4, %v8354_v6, %v3206_v28  ;;  %v3319_v36 = vsel %vm3235_vm4, %v8355_v34, %v3207_v43  ;;  %v8357_v62 = vrot.slane %v4961_v51, %v4771_v12  ;;  %v8358_v61 = vrot.slane %v4961_v51, %v4790_v21 }
  0xde   :  { %v3320_v33 = vsel %vm3235_vm4, %v8356_v13, %v3208_v52  ;;  %v8359_v43 = vrot.slane %v4961_v51, %v4793_v25  ;;  %v8360_v52 = vrot.slane %v4961_v51, %v4796_v26  ;;  %vm3571_vm6 = vcmp.eq.s32.totalorder %v6068_v16, 1 }
  0xdf   :  { %v3321_v3 = vsel %vm3235_vm4, %v8357_v62, %v3209_v15  ;;  %v3322_v28 = vsel %vm3235_vm4, %v8358_v61, %v3210_v24  ;;  %v8361_v15 = vrot.slane %v4961_v51, %v4799_v27  ;;  %v8362_v24 = vrot.slane %v4963_v58, %v4753_v7 }
  0xe0   :  { %v3323_v37 = vsel %vm3235_vm4, %v8359_v43, %v3211_v44  ;;  %v3324_v4 = vsel %vm3235_vm4, %v8360_v52, %v3212_v38  ;;  %v8363_v44 = vrot.slane %v4963_v58, %v4765_v10  ;;  %v8364_v38 = vrot.slane %v4963_v58, %v4768_v11 }
  0xe1   :  { %v3325_v56 = vsel %vm3235_vm4, %v8361_v15, %v3213_v8  ;;  %v3326_v46 = vsel %vm3235_vm4, %v8362_v24, %v3214_v23  ;;  %v8365_v51 = vrot.slane %v4963_v58, %v4771_v12  ;;  %v8366_v34 = vrot.slane %v4963_v58, %v4790_v21 }
  0xe2   :  { %v3327_v63 = vsel %vm3235_vm4, %v8363_v44, %v3215_v39  ;;  %v3328_v6 = vsel %vm3235_vm4, %v8364_v38, %v3216_v57  ;;  %v8367_v13 = vrot.slane %v4963_v58, %v4793_v25  ;;  %v8368_v62 = vrot.slane %v4963_v58, %v4796_v26 }
  0xe3   :  { %v3329_v8 = vsel %vm3235_vm4, %v8365_v51, %v3217_v0  ;;  %v3330_v23 = vsel %vm3235_vm4, %v8366_v34, %v3218_v2  ;;  %v8369_v61 = vrot.slane %v4963_v58, %v4799_v27  ;;  %v8370_v43 = vrot.slane %v4965_v35, %v4753_v7 }
  0xe4   :  { %v3331_v39 = vsel %vm3235_vm4, %v8367_v13, %v3219_v1  ;;  %v3332_v57 = vsel %vm3235_vm4, %v8368_v62, %v3220_v9  ;;  %v8371_v52 = vrot.slane %v4965_v35, %v4765_v10  ;;  %v8372_v9 = vrot.slane %v4965_v35, %v4768_v11 }
  0xe5   :  { %v3333_v0 = vsel %vm3235_vm4, %v8369_v61, %v3221_v42  ;;  %v3430_v2 = vsel %vm3347_vm3, %v8370_v43, %v3318_v20  ;;  %v8373_v30 = vrot.slane %v4965_v35, %v4771_v12  ;;  %v8374_v20 = vrot.slane %v4965_v35, %v4790_v21 }
  0xe6   :  { %v3431_v1 = vsel %vm3347_vm3, %v8371_v52, %v3319_v36  ;;  %v3432_v58 = vsel %vm3347_vm3, %v8372_v9, %v3320_v33  ;;  %v8375_v36 = vrot.slane %v4965_v35, %v4793_v25  ;;  %v8376_v33 = vrot.slane %v4965_v35, %v4796_v26  ;;  %v3682_v52 = vpop.permute.xlu0 %3681 }
  0xe7   :  { %v3433_v42 = vsel %vm3347_vm3, %v8373_v30, %v3321_v3  ;;  %v3434_v15 = vsel %vm3347_vm3, %v8374_v20, %v3322_v28  ;;  %v8377_v3 = vrot.slane %v4965_v35, %v4799_v27  ;;  %v8378_v28 = vrot.slane %v5029_v18, %v4753_v7 }
  0xe8   :  { %v3435_v24 = vsel %vm3347_vm3, %v8375_v36, %v3323_v37  ;;  %v3436_v44 = vsel %vm3347_vm3, %v8376_v33, %v3324_v4  ;;  %v8379_v37 = vrot.slane %v5029_v18, %v4765_v10  ;;  %v8380_v4 = vrot.slane %v5029_v18, %v4768_v11 }
  0xe9   :  { %v3437_v38 = vsel %vm3347_vm3, %v8377_v3, %v3325_v56  ;;  %v3438_v51 = vsel %vm3347_vm3, %v8378_v28, %v3326_v46  ;;  %v8381_v56 = vrot.slane %v5029_v18, %v4771_v12  ;;  %v8382_v46 = vrot.slane %v5029_v18, %v4790_v21  ;;  %v6266_v28 = vpop.permute.xlu1 %3793 }
  0xea   :  { %v3439_v34 = vsel %vm3347_vm3, %v8379_v37, %v3327_v63  ;;  %v3440_v35 = vsel %vm3347_vm3, %v8380_v4, %v3328_v6  ;;  %v8383_v63 = vrot.slane %v5029_v18, %v4793_v25  ;;  %v8384_v6 = vrot.slane %v5029_v18, %v4796_v26 }
  0xeb   :  { %v3441_v13 = vsel %vm3347_vm3, %v8381_v56, %v3329_v8  ;;  %v3442_v62 = vsel %vm3347_vm3, %v8382_v46, %v3330_v23  ;;  %v8385_v8 = vrot.slane %v5029_v18, %v4799_v27  ;;  %v8386_v23 = vrot.slane %v5059_v50, %v4753_v7 }
  0xec   :  { %v3443_v61 = vsel %vm3347_vm3, %v8383_v63, %v3331_v39  ;;  %v3444_v43 = vsel %vm3347_vm3, %v8384_v6, %v3332_v57  ;;  %v8387_v39 = vrot.slane %v5059_v50, %v4765_v10  ;;  %v8388_v57 = vrot.slane %v5059_v50, %v4768_v11 }
  0xed   :  { %v3445_v9 = vsel %vm3347_vm3, %v8385_v8, %v3333_v0  ;;  %v3542_v30 = vsel %vm3459_vm5, %v8386_v23, %v3430_v2  ;;  %v8389_v41 = vrot.slane %v5059_v50, %v4771_v12  ;;  %v8390_v2 = vrot.slane %v5059_v50, %v4790_v21 }
  0xee   :  { %v3543_v20 = vsel %vm3459_vm5, %v8387_v39, %v3431_v1  ;;  %v3544_v18 = vsel %vm3459_vm5, %v8388_v57, %v3432_v58  ;;  %v8391_v1 = vrot.slane %v5059_v50, %v4793_v25  ;;  %v8392_v58 = vrot.slane %v5059_v50, %v4796_v26 }
  0xef   :  { %v3545_v0 = vsel %vm3459_vm5, %v8389_v41, %v3433_v42  ;;  %v3546_v36 = vsel %vm3459_vm5, %v8390_v2, %v3434_v15  ;;  %v8393_v42 = vrot.slane %v5059_v50, %v4799_v27  ;;  %v8394_v37 = vrot.slane %v5061_v40, %v4753_v7 }
  0xf0   :  { %v3547_v33 = vsel %vm3459_vm5, %v8391_v1, %v3435_v24  ;;  %v3548_v3 = vsel %vm3459_vm5, %v8392_v58, %v3436_v44  ;;  %v8395_v4 = vrot.slane %v5061_v40, %v4765_v10  ;;  %v8396_v56 = vrot.slane %v5061_v40, %v4768_v11  ;;  %v6344_v1 = vpop.permute.xlu0 %3905 }
  0xf1   :  { %v3549_v15 = vsel %vm3459_vm5, %v8393_v42, %v3437_v38  ;;  %v3550_v24 = vsel %vm3459_vm5, %v8394_v37, %v3438_v51  ;;  %v8397_v38 = vrot.slane %v5061_v40, %v4771_v12  ;;  %v8398_v51 = vrot.slane %v5061_v40, %v4790_v21 }
  0xf2   :  { %v3551_v44 = vsel %vm3459_vm5, %v8395_v4, %v3439_v34  ;;  %v3552_v50 = vsel %vm3459_vm5, %v8396_v56, %v3440_v35  ;;  %v8399_v34 = vrot.slane %v5061_v40, %v4793_v25  ;;  %v8400_v35 = vrot.slane %v5061_v40, %v4796_v26 }
  0xf3   :  { %v3553_v46 = vsel %vm3459_vm5, %v8397_v38, %v3441_v13  ;;  %v3554_v63 = vsel %vm3459_vm5, %v8398_v51, %v3442_v62  ;;  %v8401_v13 = vrot.slane %v5061_v40, %v4799_v27  ;;  %vm3795_vm7 = vcmp.eq.s32.totalorder %v6266_v28, 1 }
  0xf4   :  { %v3555_v6 = vsel %vm3459_vm5, %v8399_v34, %v3443_v61  ;;  %v3556_v8 = vsel %vm3459_vm5, %v8400_v35, %v3444_v43  ;;  %v8402_v62 = vrot.slane %v5067_v22, %v4753_v7  ;;  %v8403_v39 = vrot.slane %v5067_v22, %v4765_v10  ;;  %v6386_v34 = vpop.permute.xlu1 %4017 }
  0xf5   :  { %v3557_v23 = vsel %vm3459_vm5, %v8401_v13, %v3445_v9  ;;  %v8404_v40 = vrot.slane %v5067_v22, %v4768_v11  ;;  %v8405_v9 = vrot.slane %v5067_v22, %v4771_v12  ;;  %v8409_v58 = vrot.slane %v5067_v22, %v4799_v27 }
  0xf6   :  { %v3654_v61 = vsel %vm3571_vm6, %v8402_v62, %v3542_v30  ;;  %v3655_v43 = vsel %vm3571_vm6, %v8403_v39, %v3543_v20  ;;  %v8406_v30 = vrot.slane %v5067_v22, %v4790_v21  ;;  %v8407_v20 = vrot.slane %v5067_v22, %v4793_v25 }
  0xf7   :  { %v3656_v5 = vsel %vm3571_vm6, %v8404_v40, %v3544_v18  ;;  %v3657_v57 = vsel %vm3571_vm6, %v8405_v9, %v3545_v0  ;;  %v8408_v18 = vrot.slane %v5067_v22, %v4796_v26  ;;  %v8410_v42 = vrot.slane %v5069_v59, %v4753_v7 }
  0xf8   :  { %v3658_v41 = vsel %vm3571_vm6, %v8406_v30, %v3546_v36  ;;  %v3659_v2 = vsel %vm3571_vm6, %v8407_v20, %v3547_v33  ;;  %v3661_v36 = vsel %vm3571_vm6, %v8409_v58, %v3549_v15  ;;  %v8411_v37 = vrot.slane %v5069_v59, %v4765_v10 }
  0xf9   :  { %v3660_v0 = vsel %vm3571_vm6, %v8408_v18, %v3548_v3  ;;  %v3662_v33 = vsel %vm3571_vm6, %v8410_v42, %v3550_v24  ;;  %v8412_v3 = vrot.slane %v5069_v59, %v4768_v11  ;;  %v8413_v15 = vrot.slane %v5069_v59, %v4771_v12 }
  0xfa   :  { %v3663_v4 = vsel %vm3571_vm6, %v8411_v37, %v3551_v44  ;;  %v8414_v24 = vrot.slane %v5069_v59, %v4790_v21  ;;  %v8415_v44 = vrot.slane %v5069_v59, %v4793_v25  ;;  %v8417_v35 = vrot.slane %v5069_v59, %v4799_v27 }
  0xfb   :  { %v3664_v22 = vsel %vm3571_vm6, %v8412_v3, %v3552_v50  ;;  %v3665_v56 = vsel %vm3571_vm6, %v8413_v15, %v3553_v46  ;;  %v8416_v50 = vrot.slane %v5069_v59, %v4796_v26  ;;  %vm3683_vm8 = vcmp.eq.s32.totalorder %v3682_v52, 1 }
  0xfc   :  { %v3666_v38 = vsel %vm3571_vm6, %v8414_v24, %v3554_v63  ;;  %v3667_v51 = vsel %vm3571_vm6, %v8415_v44, %v3555_v6  ;;  %v3669_v63 = vsel %vm3571_vm6, %v8417_v35, %v3557_v23  ;;  %vm3907_vm9 = vcmp.eq.s32.totalorder %v6344_v1, 1  ;;  %v8434_v44 = vld [vmem:[#allocation12_spill] sm:$0xff] }
  0xfd   :  { %v3668_v46 = vsel %vm3571_vm6, %v8416_v50, %v3556_v8  ;;  %v8418_v6 = vrot.slane %v5073_v49, %v4753_v7  ;;  %v8419_v62 = vrot.slane %v5073_v49, %v4765_v10  ;;  %v8420_v8 = vrot.slane %v5073_v49, %v4768_v11 }
  0xfe   :  { %v8421_v16 = vrot.slane %v5073_v49, %v4771_v12  ;;  %v8422_v40 = vrot.slane %v5073_v49, %v4790_v21  ;;  %v8423_v9 = vrot.slane %v5073_v49, %v4793_v25  ;;  %v8424_v30 = vrot.slane %v5073_v49, %v4796_v26 }
  0xff   :  { %v3766_v13 = vsel %vm3683_vm8, %v8418_v6, %v3654_v61  ;;  %v3767_v39 = vsel %vm3683_vm8, %v8419_v62, %v3655_v43  ;;  %v3768_v59 = vsel %vm3683_vm8, %v8420_v8, %v3656_v5  ;;  %v8425_v20 = vrot.slane %v5073_v49, %v4799_v27 }
 0x100   :  { %v3769_v23 = vsel %vm3683_vm8, %v8421_v16, %v3657_v57  ;;  %v3770_v61 = vsel %vm3683_vm8, %v8422_v40, %v3658_v41  ;;  %v3771_v43 = vsel %vm3683_vm8, %v8423_v9, %v3659_v2  ;;  %v3772_v5 = vsel %vm3683_vm8, %v8424_v30, %v3660_v0  ;;  %v8443_v40 = vld [vmem:[#allocation13_spill] sm:$0xff] }
 0x101   :  { %v3773_v57 = vsel %vm3683_vm8, %v8425_v20, %v3661_v36  ;;  %vm4019_vm10 = vcmp.eq.s32.totalorder %v6386_v34, 1  ;;  %v8426_v41 = vrot.slane %v5075_v55, %v4753_v7  ;;  %v8427_v2 = vrot.slane %v5075_v55, %v4765_v10 }
 0x102   :  { %v8428_v0 = vrot.slane %v5075_v55, %v4768_v11  ;;  %v8429_v49 = vrot.slane %v5075_v55, %v4771_v12  ;;  %v8430_v37 = vrot.slane %v5075_v55, %v4790_v21  ;;  %v8431_v3 = vrot.slane %v5075_v55, %v4793_v25 }
 0x103   :  { %v3774_v18 = vsel %vm3683_vm8, %v8426_v41, %v3662_v33  ;;  %v3775_v58 = vsel %vm3683_vm8, %v8427_v2, %v3663_v4  ;;  %v8432_v15 = vrot.slane %v5075_v55, %v4796_v26  ;;  %v8433_v24 = vrot.slane %v5075_v55, %v4799_v27 }
 0x104   :  { %v3776_v42 = vsel %vm3683_vm8, %v8428_v0, %v3664_v22  ;;  %v3777_v36 = vsel %vm3683_vm8, %v8429_v49, %v3665_v56  ;;  %v3778_v33 = vsel %vm3683_vm8, %v8430_v37, %v3666_v38  ;;  %v3779_v4 = vsel %vm3683_vm8, %v8431_v3, %v3667_v51  ;;  %v4130_v3 = vpop.permute.xlu0 %4129 }
 0x105   :  { %v3780_v22 = vsel %vm3683_vm8, %v8432_v15, %v3668_v46  ;;  %v3781_v56 = vsel %vm3683_vm8, %v8433_v24, %v3669_v63  ;;  %v8435_v50 = vrot.slane %v8434_v44, %v4753_v7  ;;  %v8436_v35 = vrot.slane %v8434_v44, %v4765_v10 }
 0x106   :  { %v8437_v46 = vrot.slane %v8434_v44, %v4768_v11  ;;  %v8438_v52 = vrot.slane %v8434_v44, %v4771_v12  ;;  %v8439_v6 = vrot.slane %v8434_v44, %v4790_v21  ;;  %v8440_v62 = vrot.slane %v8434_v44, %v4793_v25 }
 0x107   :  { %v3878_v38 = vsel %vm3795_vm7, %v8435_v50, %v3766_v13  ;;  %v3879_v51 = vsel %vm3795_vm7, %v8436_v35, %v3767_v39  ;;  %v8441_v8 = vrot.slane %v8434_v44, %v4796_v26  ;;  %v8442_v16 = vrot.slane %v8434_v44, %v4799_v27 }
 0x108   :  { %v3880_v55 = vsel %vm3795_vm7, %v8437_v46, %v3768_v59  ;;  %v3881_v63 = vsel %vm3795_vm7, %v8438_v52, %v3769_v23  ;;  %v3882_v13 = vsel %vm3795_vm7, %v8439_v6, %v3770_v61  ;;  %v3883_v39 = vsel %vm3795_vm7, %v8440_v62, %v3771_v43  ;;  %v6584_v62 = vpop.permute.xlu1 %4241 }
 0x109   :  { %v3884_v59 = vsel %vm3795_vm7, %v8441_v8, %v3772_v5  ;;  %v3885_v23 = vsel %vm3795_vm7, %v8442_v16, %v3773_v57  ;;  %v8444_v61 = vrot.slane %v8443_v40, %v4753_v7  ;;  %v8445_v43 = vrot.slane %v8443_v40, %v4765_v10 }
 0x10a   :  { %v8446_v5 = vrot.slane %v8443_v40, %v4768_v11  ;;  %v8447_v57 = vrot.slane %v8443_v40, %v4771_v12  ;;  %vm4243_vm11 = vcmp.eq.s32.totalorder %v6584_v62, 1  ;;  %vm4131_vm12 = vcmp.eq.s32.totalorder %v4130_v3, 1 }
 0x10b   :  { %v3886_v9 = vsel %vm3795_vm7, %v8444_v61, %v3774_v18  ;;  %v3887_v30 = vsel %vm3795_vm7, %v8445_v43, %v3775_v58  ;;  %v8448_v18 = vrot.slane %v8443_v40, %v4790_v21  ;;  %v8449_v58 = vrot.slane %v8443_v40, %v4793_v25 }
 0x10c   :  { %v3888_v20 = vsel %vm3795_vm7, %v8446_v5, %v3776_v42  ;;  %v3889_v41 = vsel %vm3795_vm7, %v8447_v57, %v3777_v36  ;;  %v8450_v42 = vrot.slane %v8443_v40, %v4796_v26  ;;  %v8451_v36 = vrot.slane %v8443_v40, %v4799_v27 }
 0x10d   :  { %v3890_v2 = vsel %vm3795_vm7, %v8448_v18, %v3778_v33  ;;  %v3891_v0 = vsel %vm3795_vm7, %v8449_v58, %v3779_v4  ;;  %v8452_v33 = vld [vmem:[#allocation14_spill] sm:$0xff] }
 0x10e   :  { %v3892_v49 = vsel %vm3795_vm7, %v8450_v42, %v3780_v22  ;;  %v3893_v37 = vsel %vm3795_vm7, %v8451_v36, %v3781_v56  ;;  %v8453_v15 = vrot.slane %v8452_v33, %v4753_v7  ;;  %v8454_v4 = vrot.slane %v8452_v33, %v4765_v10 }
 0x10f   :  { %v8455_v22 = vrot.slane %v8452_v33, %v4768_v11  ;;  %v8456_v56 = vrot.slane %v8452_v33, %v4771_v12 }
 0x110   :  { %v3990_v24 = vsel %vm3907_vm9, %v8453_v15, %v3878_v38  ;;  %v3991_v44 = vsel %vm3907_vm9, %v8454_v4, %v3879_v51  ;;  %v8457_v38 = vrot.slane %v8452_v33, %v4790_v21  ;;  %v8458_v51 = vrot.slane %v8452_v33, %v4793_v25 }
 0x111   :  { %v3992_v28 = vsel %vm3907_vm9, %v8455_v22, %v3880_v55  ;;  %v3993_v50 = vsel %vm3907_vm9, %v8456_v56, %v3881_v63  ;;  %v8459_v55 = vrot.slane %v8452_v33, %v4796_v26  ;;  %v8460_v63 = vrot.slane %v8452_v33, %v4799_v27 }
 0x112   :  { %v3994_v35 = vsel %vm3907_vm9, %v8457_v38, %v3882_v13  ;;  %v3995_v46 = vsel %vm3907_vm9, %v8458_v51, %v3883_v39  ;;  %v8461_v13 = vld [vmem:[#allocation15_spill] sm:$0xff]  ;;  %v6662_v38 = vpop.permute.xlu0 %4353 }
 0x113   :  { %v3996_v52 = vsel %vm3907_vm9, %v8459_v55, %v3884_v59  ;;  %v3997_v6 = vsel %vm3907_vm9, %v8460_v63, %v3885_v23  ;;  %v8462_v8 = vrot.slane %v8461_v13, %v4753_v7  ;;  %v8463_v16 = vrot.slane %v8461_v13, %v4765_v10  ;;  %v8479_v55 = vld [vmem:[#allocation17_spill] sm:$0xff] }
 0x114   :  { %v8464_v40 = vrot.slane %v8461_v13, %v4768_v11  ;;  %v8465_v61 = vrot.slane %v8461_v13, %v4771_v12  ;;  %v8480_v63 = vrot.slane %v8479_v55, %v4753_v7  ;;  %vm4355_vm13 = vcmp.eq.s32.totalorder %v6662_v38, 1 }
 0x115   :  { %v3998_v39 = vsel %vm3907_vm9, %v8462_v8, %v3886_v9  ;;  %v3999_v59 = vsel %vm3907_vm9, %v8463_v16, %v3887_v30  ;;  %v8466_v9 = vrot.slane %v8461_v13, %v4790_v21  ;;  %v8467_v30 = vrot.slane %v8461_v13, %v4793_v25 }
 0x116   :  { %v4000_v23 = vsel %vm3907_vm9, %v8464_v40, %v3888_v20  ;;  %v4001_v43 = vsel %vm3907_vm9, %v8465_v61, %v3889_v41  ;;  %v8468_v20 = vrot.slane %v8461_v13, %v4796_v26  ;;  %v8469_v41 = vrot.slane %v8461_v13, %v4799_v27 }
 0x117   :  { %v4002_v5 = vsel %vm3907_vm9, %v8466_v9, %v3890_v2  ;;  %v4003_v57 = vsel %vm3907_vm9, %v8467_v30, %v3891_v0  ;;  %v8470_v2 = vld [vmem:[#allocation16_spill] sm:$0xff]  ;;  %v8481_v13 = vrot.slane %v8479_v55, %v4765_v10  ;;  %v8482_v8 = vrot.slane %v8479_v55, %v4768_v11 }
 0x118   :  { %v4004_v18 = vsel %vm3907_vm9, %v8468_v20, %v3892_v49  ;;  %v4005_v58 = vsel %vm3907_vm9, %v8469_v41, %v3893_v37  ;;  %v8471_v42 = vrot.slane %v8470_v2, %v4753_v7  ;;  %v8472_v36 = vrot.slane %v8470_v2, %v4765_v10  ;;  %v8488_v41 = vld [vmem:[#allocation18_spill] sm:$0xff] }
 0x119   :  { %v8473_v33 = vrot.slane %v8470_v2, %v4768_v11  ;;  %v8474_v37 = vrot.slane %v8470_v2, %v4771_v12  ;;  %v8478_v51 = vrot.slane %v8470_v2, %v4799_v27  ;;  %v4112_v16 = vsel %vm4019_vm10, %v8482_v8, %v4000_v23 }
 0x11a   :  { %v4102_v0 = vsel %vm4019_vm10, %v8471_v42, %v3990_v24  ;;  %v4103_v49 = vsel %vm4019_vm10, %v8472_v36, %v3991_v44  ;;  %v8475_v24 = vrot.slane %v8470_v2, %v4790_v21  ;;  %v8476_v44 = vrot.slane %v8470_v2, %v4793_v25 }
 0x11b   :  { %v4104_v1 = vsel %vm4019_vm10, %v8473_v33, %v3992_v28  ;;  %v4105_v15 = vsel %vm4019_vm10, %v8474_v37, %v3993_v50  ;;  %v8477_v28 = vrot.slane %v8470_v2, %v4796_v26  ;;  %v6664_v50 = vld [vmem:[#allocation7 + $0x88] sm:$0xff]  ;;  %v8486_v23 = vrot.slane %v8479_v55, %v4796_v26 }
 0x11c   :  { %v4106_v4 = vsel %vm4019_vm10, %v8475_v24, %v3994_v35  ;;  %v4107_v22 = vsel %vm4019_vm10, %v8476_v44, %v3995_v46  ;;  %v4109_v35 = vsel %vm4019_vm10, %v8478_v51, %v3997_v6  ;;  %v4110_v46 = vsel %vm4019_vm10, %v8480_v63, %v3998_v39  ;;  %v8497_v51 = vld [vmem:[#allocation19_spill] sm:$0xff] }
 0x11d   :  { %v4108_v56 = vsel %vm4019_vm10, %v8477_v28, %v3996_v52  ;;  %v4111_v52 = vsel %vm4019_vm10, %v8481_v13, %v3999_v59  ;;  %v8483_v6 = vrot.slane %v8479_v55, %v4771_v12  ;;  %v8484_v39 = vrot.slane %v8479_v55, %v4790_v21 }
 0x11e   :  { %v8485_v59 = vrot.slane %v8479_v55, %v4793_v25  ;;  %v4116_v30 = vsel %vm4019_vm10, %v8486_v23, %v4004_v18  ;;  %v8490_v18 = vrot.slane %v8488_v41, %v4765_v10  ;;  %v8491_v34 = vrot.slane %v8488_v41, %v4768_v11 }
 0x11f   :  { %v4113_v40 = vsel %vm4019_vm10, %v8483_v6, %v4001_v43  ;;  %v4114_v61 = vsel %vm4019_vm10, %v8484_v39, %v4002_v5  ;;  %v8487_v43 = vrot.slane %v8479_v55, %v4799_v27  ;;  %v851_v5 = vrot.slane %v6664_v50, %v4753_v7 }
 0x120   :  { %v4115_v9 = vsel %vm4019_vm10, %v8485_v59, %v4003_v57  ;;  %v8489_v57 = vrot.slane %v8488_v41, %v4753_v7  ;;  %v4215_v42 = vsel %vm4131_vm12, %v8490_v18, %v4103_v49  ;;  %v8492_v36 = vrot.slane %v8488_v41, %v4771_v12 }
 0x121   :  { %v4117_v20 = vsel %vm4019_vm10, %v8487_v43, %v4005_v58  ;;  %v4216_v58 = vsel %vm4131_vm12, %v8491_v34, %v4104_v1  ;;  %v8493_v37 = vrot.slane %v8488_v41, %v4790_v21  ;;  %v8494_v24 = vrot.slane %v8488_v41, %v4793_v25  ;;  %v8506_v43 = vld [vmem:[#allocation20_spill] sm:$0xff] }
 0x122   :  { %v4214_v2 = vsel %vm4131_vm12, %v8489_v57, %v4102_v0  ;;  %v4217_v33 = vsel %vm4131_vm12, %v8492_v36, %v4105_v15  ;;  %v8495_v44 = vrot.slane %v8488_v41, %v4796_v26  ;;  %v8496_v28 = vrot.slane %v8488_v41, %v4799_v27 }
 0x123   :  { %v4218_v0 = vsel %vm4131_vm12, %v8493_v37, %v4106_v4  ;;  %v4219_v49 = vsel %vm4131_vm12, %v8494_v24, %v4107_v22  ;;  %v8498_v55 = vrot.slane %v8497_v51, %v4753_v7  ;;  %v8499_v63 = vrot.slane %v8497_v51, %v4765_v10 }
 0x124   :  { %v4220_v1 = vsel %vm4131_vm12, %v8495_v44, %v4108_v56  ;;  %v4221_v15 = vsel %vm4131_vm12, %v8496_v28, %v4109_v35  ;;  %v8500_v13 = vrot.slane %v8497_v51, %v4768_v11  ;;  %v8501_v8 = vrot.slane %v8497_v51, %v4771_v12  ;;  %v8515_v44 = vld [vmem:[#allocation21_spill] sm:$0xff] }
 0x125   :  { %v4222_v4 = vsel %vm4131_vm12, %v8498_v55, %v4110_v46  ;;  %v4223_v22 = vsel %vm4131_vm12, %v8499_v63, %v4111_v52  ;;  %v8502_v6 = vrot.slane %v8497_v51, %v4790_v21  ;;  %v8503_v39 = vrot.slane %v8497_v51, %v4793_v25 }
 0x126   :  { %v4224_v56 = vsel %vm4131_vm12, %v8500_v13, %v4112_v16  ;;  %v4225_v35 = vsel %vm4131_vm12, %v8501_v8, %v4113_v40  ;;  %v8504_v59 = vrot.slane %v8497_v51, %v4796_v26  ;;  %v8505_v23 = vrot.slane %v8497_v51, %v4799_v27 }
 0x127   :  { %v4226_v46 = vsel %vm4131_vm12, %v8502_v6, %v4114_v61  ;;  %v4227_v52 = vsel %vm4131_vm12, %v8503_v39, %v4115_v9  ;;  %v8507_v41 = vrot.slane %v8506_v43, %v4753_v7  ;;  %v8508_v57 = vrot.slane %v8506_v43, %v4765_v10 }
 0x128   :  { %v4228_v16 = vsel %vm4131_vm12, %v8504_v59, %v4116_v30  ;;  %v4229_v40 = vsel %vm4131_vm12, %v8505_v23, %v4117_v20  ;;  %v8509_v30 = vrot.slane %v8506_v43, %v4768_v11  ;;  %v8510_v3 = vrot.slane %v8506_v43, %v4771_v12  ;;  %v8524_v59 = vld [vmem:[#allocation22_spill] sm:$0xff] }
 0x129   :  { %v4326_v61 = vsel %vm4243_vm11, %v8507_v41, %v4214_v2  ;;  %v4327_v9 = vsel %vm4243_vm11, %v8508_v57, %v4215_v42  ;;  %v8511_v2 = vrot.slane %v8506_v43, %v4790_v21  ;;  %v8512_v42 = vrot.slane %v8506_v43, %v4793_v25 }
 0x12a   :  { %v4328_v18 = vsel %vm4243_vm11, %v8509_v30, %v4216_v58  ;;  %v4329_v20 = vsel %vm4243_vm11, %v8510_v3, %v4217_v33  ;;  %v8513_v58 = vrot.slane %v8506_v43, %v4796_v26  ;;  %v8514_v33 = vrot.slane %v8506_v43, %v4799_v27 }
 0x12b   :  { %v4330_v34 = vsel %vm4243_vm11, %v8511_v2, %v4218_v0  ;;  %v4331_v36 = vsel %vm4243_vm11, %v8512_v42, %v4219_v49  ;;  %v8516_v0 = vrot.slane %v8515_v44, %v4753_v7  ;;  %v8517_v49 = vrot.slane %v8515_v44, %v4765_v10 }
 0x12c   :  { %v4332_v37 = vsel %vm4243_vm11, %v8513_v58, %v4220_v1  ;;  %v4333_v24 = vsel %vm4243_vm11, %v8514_v33, %v4221_v15  ;;  %v8518_v1 = vrot.slane %v8515_v44, %v4768_v11  ;;  %v8519_v15 = vrot.slane %v8515_v44, %v4771_v12 }
 0x12d   :  { %v4334_v28 = vsel %vm4243_vm11, %v8516_v0, %v4222_v4  ;;  %v4335_v51 = vsel %vm4243_vm11, %v8517_v49, %v4223_v22  ;;  %v8520_v4 = vrot.slane %v8515_v44, %v4790_v21  ;;  %v8521_v22 = vrot.slane %v8515_v44, %v4793_v25 }
 0x12e   :  { %v4336_v55 = vsel %vm4243_vm11, %v8518_v1, %v4224_v56  ;;  %v4337_v63 = vsel %vm4243_vm11, %v8519_v15, %v4225_v35  ;;  %v8522_v56 = vrot.slane %v8515_v44, %v4796_v26  ;;  %v8523_v35 = vrot.slane %v8515_v44, %v4799_v27 }
 0x12f   :  { %v4338_v13 = vsel %vm4243_vm11, %v8520_v4, %v4226_v46  ;;  %v4339_v8 = vsel %vm4243_vm11, %v8521_v22, %v4227_v52  ;;  %v8525_v46 = vrot.slane %v8524_v59, %v4753_v7  ;;  %v8526_v52 = vrot.slane %v8524_v59, %v4765_v10 }
 0x130   :  { %v4340_v6 = vsel %vm4243_vm11, %v8522_v56, %v4228_v16  ;;  %v4341_v39 = vsel %vm4243_vm11, %v8523_v35, %v4229_v40  ;;  %v8527_v16 = vrot.slane %v8524_v59, %v4768_v11  ;;  %v8528_v62 = vrot.slane %v8524_v59, %v4771_v12 }
 0x131   :  { %v4438_v23 = vsel %vm4355_vm13, %v8525_v46, %v4326_v61  ;;  %v4439_v43 = vsel %vm4355_vm13, %v8526_v52, %v4327_v9  ;;  %v8529_v61 = vrot.slane %v8524_v59, %v4790_v21  ;;  %v8530_v9 = vrot.slane %v8524_v59, %v4793_v25 }
 0x132   :  { %v4440_v41 = vsel %vm4355_vm13, %v8527_v16, %v4328_v18  ;;  %v4441_v40 = vsel %vm4355_vm13, %v8528_v62, %v4329_v20  ;;  %v8531_v18 = vrot.slane %v8524_v59, %v4796_v26  ;;  %v8532_v20 = vrot.slane %v8524_v59, %v4799_v27 }
 0x133   :  { %v4442_v57 = vsel %vm4355_vm13, %v8529_v61, %v4330_v34  ;;  %v4443_v30 = vsel %vm4355_vm13, %v8530_v9, %v4331_v36  ;;  %v8533_v34 = vrot.slane %v5323_v19, %v4753_v7  ;;  %v8534_v36 = vrot.slane %v5323_v19, %v4765_v10 }
 0x134   :  { %v4444_v3 = vsel %vm4355_vm13, %v8531_v18, %v4332_v37  ;;  %v4445_v2 = vsel %vm4355_vm13, %v8532_v20, %v4333_v24  ;;  %v8535_v37 = vrot.slane %v5323_v19, %v4768_v11  ;;  %v8536_v24 = vrot.slane %v5323_v19, %v4771_v12  ;;  %v6952_v18 = vld [vmem:[#allocation7 + $0x98] sm:$0xff] }
 0x135   :  { %v4446_v42 = vsel %vm4355_vm13, %v8533_v34, %v4334_v28  ;;  %v4447_v58 = vsel %vm4355_vm13, %v8534_v36, %v4335_v51  ;;  %v8537_v0 = vrot.slane %v5323_v19, %v4790_v21  ;;  %v8538_v49 = vrot.slane %v5323_v19, %v4793_v25 }
 0x136   :  { %v4448_v33 = vsel %vm4355_vm13, %v8535_v37, %v4336_v55  ;;  %v4449_v44 = vsel %vm4355_vm13, %v8536_v24, %v4337_v63  ;;  %v8539_v1 = vrot.slane %v5323_v19, %v4796_v26  ;;  %v8540_v15 = vrot.slane %v5323_v19, %v4799_v27 }
 0x137   :  { %v4450_v28 = vsel %vm4355_vm13, %v8537_v0, %v4338_v13  ;;  %v4451_v51 = vsel %vm4355_vm13, %v8538_v49, %v4339_v8  ;;  %v4470_v4 = vcombine.low %v4438_v23, %v4439_v43  ;;  %v4471_v13 = vcombine.low %v4440_v41, %v4441_v40  ;;  %v6946_v43 = vld [vmem:[#allocation7 + $0x90] sm:$0xff] }
 0x138   :  { %v4452_v55 = vsel %vm4355_vm13, %v8539_v1, %v4340_v6  ;;  %v4453_v63 = vsel %vm4355_vm13, %v8540_v15, %v4341_v39  ;;  %v4487_v22 = vcombine.low %v4442_v57, %v4443_v30  ;;  %v4488_v56 = vcombine.low %v4444_v3, %v4445_v2  ;;  %v6984_v1 = vld [vmem:[#allocation7 + $0xa8] sm:$0xff] }
 0x139   :  { %v4504_v35 = vcombine.low %v4446_v42, %v4447_v58  ;;  %v4505_v59 = vcombine.low %v4448_v33, %v4449_v44  ;;  %v4521_v46 = vcombine.low %v4450_v28, %v4451_v51  ;;  %v4522_v8 = vcombine.low %v4452_v55, %v4453_v63  ;;  %v6966_v58 = vld [vmem:[#allocation7 + $0xa0] sm:$0xff] }
 0x13a   :  { %v4478_v52 = vrot.slane %v4470_v4, %v5340_v54  ;;  %v4485_v16 = vrot.slane %v4471_v13, %v5340_v54  ;;  %v4495_v6 = vrot.slane %v4487_v22, %v5340_v54  ;;  %v4502_v62 = vrot.slane %v4488_v56, %v5340_v54  ;;  %v7164_v22 = vld [vmem:[#allocation7 + $0xf8] sm:$0xff]  ;;  %v7182_v56 = vld [vmem:[#allocation7 + $0x100] sm:$0xff]  ;;  %v7200_v4 = vld [vmem:[#allocation7 + $0x108] sm:$0xff] }
 0x13b   :  { %v4512_v19 = vrot.slane %v4504_v35, %v5340_v54  ;;  %v4519_v38 = vrot.slane %v4505_v59, %v5340_v54  ;;  %v4529_v39 = vrot.slane %v4521_v46, %v5340_v54  ;;  %v4536_v23 = vrot.slane %v4522_v8, %v5340_v54  ;;  %v7002_v59 = vld [vmem:[#allocation7 + $0xb0] sm:$0xff]  ;;  %v7092_v8 = vld [vmem:[#allocation7 + $0xd8] sm:$0xff]  ;;  %v7128_v35 = vld [vmem:[#allocation7 + $0xe8] sm:$0xff] }
 0x13c   :  { %v4486_v41 = vcombine.low %v4478_v52, %v4485_v16  ;;  %v4503_v40 = vcombine.low %v4495_v6, %v4502_v62  ;;  %v855_v61 = vrot.slane %v6664_v50, %v4765_v10  ;;  %v859_v57 = vrot.slane %v6664_v50, %v4768_v11  ;;  %v7056_v16 = vld [vmem:[#allocation7 + $0xc8] sm:$0xff]  ;;  %v7074_v6 = vld [vmem:[#allocation7 + $0xd0] sm:$0xff]  ;;  %v7110_v52 = vld [vmem:[#allocation7 + $0xe0] sm:$0xff] }
 0x13d   :  { %v4520_v9 = vcombine.low %v4512_v19, %v4519_v38  ;;  %v4537_v30 = vcombine.low %v4529_v39, %v4536_v23  ;;  %v863_v3 = vrot.slane %v6664_v50, %v4771_v12  ;;  %v867_v20 = vrot.slane %v6664_v50, %v4790_v21  ;;  %v7020_v39 = vld [vmem:[#allocation7 + $0xb8] sm:$0xff]  ;;  %v7038_v19 = vld [vmem:[#allocation7 + $0xc0] sm:$0xff]  ;;  %v7146_v46 = vld [vmem:[#allocation7 + $0xf0] sm:$0xff] }
 0x13e   :  { %4542 = vst [vmem:[#allocation8 + $0x28] sm:$0xff] %v4486_v41  ;;  %4543 = vst [vmem:[#allocation8 + $0x30] sm:$0xff] %v4503_v40  ;;  %v871_v2 = vrot.slane %v6664_v50, %v4793_v25  ;;  %v875_v34 = vrot.slane %v6664_v50, %v4796_v26  ;;  %v879_v42 = vrot.slane %v6664_v50, %v4799_v27 }
 0x13f   :  { %4544 = vst [vmem:[#allocation8 + $0x38] sm:$0xff] %v4520_v9  ;;  %4545 = vst [vmem:[#allocation8 + $0x40] sm:$0xff] %v4537_v30  ;;  %v887_v37 = vrot.slane %v6946_v43, %v4765_v10  ;;  %v8541_v30 = vrot.slane %v5422_v32, %v4765_v10  ;;  %v8542_v23 = vrot.slane %v5422_v32, %v4753_v7 }
 0x140   :  { %v8543_v62 = vrot.slane %v5422_v32, %v4771_v12  ;;  %v8544_v41 = vrot.slane %v5422_v32, %v4768_v11  ;;  %v8545_v9 = vrot.slane %v5422_v32, %v4793_v25  ;;  %v8546_v38 = vrot.slane %v5422_v32, %v4790_v21 }
 0x141   :  { %v1392_v13 = vcombine.low %v8542_v23, %v8541_v30  ;;  %v8547_v63 = vrot.slane %v5422_v32, %v4799_v27  ;;  %v8548_v23 = vrot.slane %v5422_v32, %v4796_v26  ;;  %v8549_v51 = vrot.slane %v5429_v31, %v4765_v10 }
 0x142   :  { %v1393_v40 = vcombine.low %v8544_v41, %v8543_v62  ;;  %v1409_v15 = vcombine.low %v8546_v38, %v8545_v9  ;;  %v8550_v62 = vrot.slane %v5429_v31, %v4753_v7  ;;  %v8551_v28 = vrot.slane %v5429_v31, %v4771_v12 }
 0x143   :  { %v1410_v30 = vcombine.low %v8548_v23, %v8547_v63  ;;  %v1400_v55 = vrot.slane %v1392_v13, %v5340_v54  ;;  %v8552_v38 = vrot.slane %v5429_v31, %v4768_v11  ;;  %v8553_v32 = vrot.slane %v5429_v31, %v4793_v25 }
 0x144   :  { %v1426_v41 = vcombine.low %v8550_v62, %v8549_v51  ;;  %v8554_v63 = vrot.slane %v5429_v31, %v4790_v21  ;;  %v8555_v49 = vrot.slane %v5429_v31, %v4799_v27  ;;  %v8556_v51 = vrot.slane %v5429_v31, %v4796_v26 }
 0x145   :  { %v1427_v9 = vcombine.low %v8552_v38, %v8551_v28  ;;  %v1407_v62 = vrot.slane %v1393_v40, %v5340_v54  ;;  %v1417_v44 = vrot.slane %v1409_v15, %v5340_v54  ;;  %v1424_v28 = vrot.slane %v1410_v30, %v5340_v54 }
 0x146   :  { %v1443_v23 = vcombine.low %v8554_v63, %v8553_v32  ;;  %v1444_v13 = vcombine.low %v8556_v51, %v8555_v49  ;;  %v1434_v38 = vrot.slane %v1426_v41, %v5340_v54  ;;  %v8557_v63 = vrot.slane %v5438_v47, %v4765_v10 }
 0x147   :  { %v1441_v0 = vrot.slane %v1427_v9, %v5340_v54  ;;  %v8558_v31 = vrot.slane %v5438_v47, %v4753_v7  ;;  %v1408_v40 = vcombine.low %v1400_v55, %v1407_v62  ;;  %v1425_v51 = vcombine.low %v1417_v44, %v1424_v28 }
 0x148   :  { %v1451_v33 = vrot.slane %v1443_v23, %v5340_v54  ;;  %v1458_v32 = vrot.slane %v1444_v13, %v5340_v54  ;;  %v8559_v15 = vrot.slane %v5438_v47, %v4771_v12  ;;  %v8560_v30 = vrot.slane %v5438_v47, %v4768_v11 }
 0x149   :  { %v1460_v49 = vcombine.low %v8558_v31, %v8557_v63  ;;  %v8561_v9 = vrot.slane %v5438_v47, %v4793_v25  ;;  %v8562_v23 = vrot.slane %v5438_v47, %v4790_v21  ;;  %v1442_v24 = vcombine.low %v1434_v38, %v1441_v0  ;;  %2616 = vst [vmem:[#allocation8 + $0x48] sm:$0xff] %v1408_v40 }
 0x14a   :  { %v1461_v41 = vcombine.low %v8560_v30, %v8559_v15  ;;  %v1459_v36 = vcombine.low %v1451_v33, %v1458_v32  ;;  %v8563_v44 = vrot.slane %v5438_v47, %v4799_v27  ;;  %v8564_v55 = vrot.slane %v5438_v47, %v4796_v26  ;;  %2617 = vst [vmem:[#allocation8 + $0x50] sm:$0xff] %v1425_v51 }
 0x14b   :  { %v1477_v13 = vcombine.low %v8562_v23, %v8561_v9  ;;  %v1468_v63 = vrot.slane %v1460_v49, %v5340_v54  ;;  %v8565_v15 = vrot.slane %v5454_v45, %v4765_v10  ;;  %v8566_v0 = vrot.slane %v5454_v45, %v4753_v7  ;;  %2618 = vst [vmem:[#allocation8 + $0x58] sm:$0xff] %v1442_v24 }
 0x14c   :  { %v1478_v62 = vcombine.low %v8564_v55, %v8563_v44  ;;  %v1475_v28 = vrot.slane %v1461_v41, %v5340_v54  ;;  %v8567_v38 = vrot.slane %v5454_v45, %v4771_v12  ;;  %v8568_v32 = vrot.slane %v5454_v45, %v4768_v11  ;;  %2619 = vst [vmem:[#allocation8 + $0x60] sm:$0xff] %v1459_v36 }
 0x14d   :  { %v1485_v31 = vrot.slane %v1477_v13, %v5340_v54  ;;  %v1494_v33 = vcombine.low %v8566_v0, %v8565_v15  ;;  %v8569_v30 = vrot.slane %v5454_v45, %v4793_v25  ;;  %v8570_v41 = vrot.slane %v5454_v45, %v4790_v21 }
 0x14e   :  { %v1495_v49 = vcombine.low %v8568_v32, %v8567_v38  ;;  %v1492_v47 = vrot.slane %v1478_v62, %v5340_v54  ;;  %v8571_v23 = vrot.slane %v5454_v45, %v4799_v27  ;;  %v8572_v13 = vrot.slane %v5454_v45, %v4796_v26 }
 0x14f   :  { %v1511_v9 = vcombine.low %v8570_v41, %v8569_v30  ;;  %v8573_v40 = vrot.slane %v5472_v48, %v4765_v10  ;;  %v8574_v51 = vrot.slane %v5472_v48, %v4753_v7  ;;  %v1476_v62 = vcombine.low %v1468_v63, %v1475_v28 }
 0x150   :  { %v1512_v44 = vcombine.low %v8572_v13, %v8571_v23  ;;  %v1502_v15 = vrot.slane %v1494_v33, %v5340_v54  ;;  %v1509_v0 = vrot.slane %v1495_v49, %v5340_v54  ;;  %v8575_v38 = vrot.slane %v5472_v48, %v4771_v12 }
 0x151   :  { %v1528_v55 = vcombine.low %v8574_v51, %v8573_v40  ;;  %v8576_v45 = vrot.slane %v5472_v48, %v4768_v11  ;;  %v1493_v30 = vcombine.low %v1485_v31, %v1492_v47  ;;  %v1519_v41 = vrot.slane %v1511_v9, %v5340_v54  ;;  %2620 = vst [vmem:[#allocation8 + $0x68] sm:$0xff] %v1476_v62 }
 0x152   :  { %v1526_v23 = vrot.slane %v1512_v44, %v5340_v54  ;;  %v1510_v36 = vcombine.low %v1502_v15, %v1509_v0  ;;  %v8577_v28 = vrot.slane %v5472_v48, %v4793_v25  ;;  %v8578_v33 = vrot.slane %v5472_v48, %v4790_v21 }
 0x153   :  { %v1529_v32 = vcombine.low %v8576_v45, %v8575_v38  ;;  %v1536_v24 = vrot.slane %v1528_v55, %v5340_v54  ;;  %v8579_v13 = vrot.slane %v5472_v48, %v4799_v27  ;;  %v8580_v31 = vrot.slane %v5472_v48, %v4796_v26  ;;  %2621 = vst [vmem:[#allocation8 + $0x70] sm:$0xff] %v1493_v30 }
 0x154   :  { %v1545_v49 = vcombine.low %v8578_v33, %v8577_v28  ;;  %v1527_v9 = vcombine.low %v1519_v41, %v1526_v23  ;;  %v8581_v44 = vrot.slane %v5490_v53, %v4765_v10  ;;  %v8582_v40 = vrot.slane %v5490_v53, %v4753_v7  ;;  %2622 = vst [vmem:[#allocation8 + $0x78] sm:$0xff] %v1510_v36 }
 0x155   :  { %v1543_v63 = vrot.slane %v1529_v32, %v5340_v54  ;;  %v1546_v47 = vcombine.low %v8580_v31, %v8579_v13  ;;  %v8583_v55 = vrot.slane %v5490_v53, %v4771_v12  ;;  %v8584_v15 = vrot.slane %v5490_v53, %v4768_v11 }
 0x156   :  { %v1562_v51 = vcombine.low %v8582_v40, %v8581_v44  ;;  %v8585_v48 = vrot.slane %v5490_v53, %v4793_v25  ;;  %v8586_v62 = vrot.slane %v5490_v53, %v4790_v21  ;;  %v1553_v32 = vrot.slane %v1545_v49, %v5340_v54  ;;  %2623 = vst [vmem:[#allocation8 + $0x80] sm:$0xff] %v1527_v9 }
 0x157   :  { %v1563_v0 = vcombine.low %v8584_v15, %v8583_v55  ;;  %v1544_v45 = vcombine.low %v1536_v24, %v1543_v63  ;;  %v1560_v41 = vrot.slane %v1546_v47, %v5340_v54  ;;  %v8587_v23 = vrot.slane %v5490_v53, %v4799_v27 }
 0x158   :  { %v1579_v38 = vcombine.low %v8586_v62, %v8585_v48  ;;  %v8588_v28 = vrot.slane %v5490_v53, %v4796_v26  ;;  %v1570_v13 = vrot.slane %v1562_v51, %v5340_v54  ;;  %v8589_v30 = vrot.slane %v5508_v17, %v4765_v10 }
 0x159   :  { %v1577_v31 = vrot.slane %v1563_v0, %v5340_v54  ;;  %v8590_v24 = vrot.slane %v5508_v17, %v4753_v7  ;;  %v1561_v49 = vcombine.low %v1553_v32, %v1560_v41  ;;  %v8591_v53 = vrot.slane %v5508_v17, %v4771_v12  ;;  %2624 = vst [vmem:[#allocation8 + $0x88] sm:$0xff] %v1544_v45 }
 0x15a   :  { %v1580_v33 = vcombine.low %v8588_v28, %v8587_v23  ;;  %v1587_v44 = vrot.slane %v1579_v38, %v5340_v54  ;;  %v8592_v36 = vrot.slane %v5508_v17, %v4768_v11  ;;  %v8593_v51 = vrot.slane %v5508_v17, %v4793_v25 }
 0x15b   :  { %v1596_v63 = vcombine.low %v8590_v24, %v8589_v30  ;;  %v8594_v55 = vrot.slane %v5508_v17, %v4790_v21  ;;  %v1578_v0 = vcombine.low %v1570_v13, %v1577_v31  ;;  %v8595_v48 = vrot.slane %v5508_v17, %v4799_v27  ;;  %2625 = vst [vmem:[#allocation8 + $0x90] sm:$0xff] %v1561_v49 }
 0x15c   :  { %v1594_v47 = vrot.slane %v1580_v33, %v5340_v54  ;;  %v1597_v40 = vcombine.low %v8592_v36, %v8591_v53  ;;  %v8596_v62 = vrot.slane %v5508_v17, %v4796_v26  ;;  %v8597_v32 = vrot.slane %v5526_v14, %v4765_v10 }
 0x15d   :  { %v1613_v15 = vcombine.low %v8594_v55, %v8593_v51  ;;  %v1604_v9 = vrot.slane %v1596_v63, %v5340_v54  ;;  %v8598_v41 = vrot.slane %v5526_v14, %v4753_v7  ;;  %v8599_v13 = vrot.slane %v5526_v14, %v4771_v12  ;;  %2626 = vst [vmem:[#allocation8 + $0x98] sm:$0xff] %v1578_v0  ;;  %v8605_v55 = vld [vmem:[#allocation23_spill] sm:$0xff] }
 0x15e   :  { %v1614_v38 = vcombine.low %v8596_v62, %v8595_v48  ;;  %v1595_v28 = vcombine.low %v1587_v44, %v1594_v47  ;;  %v1611_v45 = vrot.slane %v1597_v40, %v5340_v54  ;;  %v8600_v31 = vrot.slane %v5526_v14, %v4768_v11 }
 0x15f   :  { %v1630_v23 = vcombine.low %v8598_v41, %v8597_v32  ;;  %v1621_v33 = vrot.slane %v1613_v15, %v5340_v54  ;;  %v8601_v63 = vrot.slane %v5526_v14, %v4793_v25  ;;  %v8602_v44 = vrot.slane %v5526_v14, %v4790_v21 }
 0x160   :  { %v1631_v17 = vcombine.low %v8600_v31, %v8599_v13  ;;  %v1628_v30 = vrot.slane %v1614_v38, %v5340_v54  ;;  %v8603_v53 = vrot.slane %v5526_v14, %v4799_v27  ;;  %v8604_v36 = vrot.slane %v5526_v14, %v4796_v26  ;;  %2627 = vst [vmem:[#allocation8 + $0xa0] sm:$0xff] %v1595_v28 }
 0x161   :  { %v1638_v24 = vrot.slane %v1630_v23, %v5340_v54  ;;  %v1647_v47 = vcombine.low %v8602_v44, %v8601_v63  ;;  %v1612_v49 = vcombine.low %v1604_v9, %v1611_v45  ;;  %v8606_v15 = vrot.slane %v8605_v55, %v4765_v10 }
 0x162   :  { %v1648_v40 = vcombine.low %v8604_v36, %v8603_v53  ;;  %v1645_v51 = vrot.slane %v1631_v17, %v5340_v54  ;;  %v8607_v48 = vrot.slane %v8605_v55, %v4753_v7  ;;  %v8608_v38 = vrot.slane %v8605_v55, %v4771_v12  ;;  %v8614_v53 = vld [vmem:[#allocation24_spill] sm:$0xff] }
 0x163   :  { %v8609_v32 = vrot.slane %v8605_v55, %v4768_v11  ;;  %v1629_v14 = vcombine.low %v1621_v33, %v1628_v30  ;;  %v1655_v0 = vrot.slane %v1647_v47, %v5340_v54  ;;  %v8610_v23 = vrot.slane %v8605_v55, %v4793_v25  ;;  %2628 = vst [vmem:[#allocation8 + $0xa8] sm:$0xff] %v1612_v49 }
 0x164   :  { %v1664_v62 = vcombine.low %v8607_v48, %v8606_v15  ;;  %v1662_v9 = vrot.slane %v1648_v40, %v5340_v54  ;;  %v8611_v45 = vrot.slane %v8605_v55, %v4790_v21  ;;  %v1646_v31 = vcombine.low %v1638_v24, %v1645_v51 }
 0x165   :  { %v1665_v41 = vcombine.low %v8609_v32, %v8608_v38  ;;  %v8612_v28 = vrot.slane %v8605_v55, %v4799_v27  ;;  %v8613_v33 = vrot.slane %v8605_v55, %v4796_v26  ;;  %v8615_v36 = vrot.slane %v8614_v53, %v4765_v10  ;;  %2629 = vst [vmem:[#allocation8 + $0xb0] sm:$0xff] %v1629_v14 }
 0x166   :  { %v1681_v13 = vcombine.low %v8611_v45, %v8610_v23  ;;  %v1672_v17 = vrot.slane %v1664_v62, %v5340_v54  ;;  %v1663_v44 = vcombine.low %v1655_v0, %v1662_v9  ;;  %v8616_v24 = vrot.slane %v8614_v53, %v4753_v7  ;;  %2630 = vst [vmem:[#allocation8 + $0xb8] sm:$0xff] %v1646_v31  ;;  %v8623_v45 = vld [vmem:[#allocation25_spill] sm:$0xff] }
 0x167   :  { %v1679_v63 = vrot.slane %v1665_v41, %v5340_v54  ;;  %v1682_v30 = vcombine.low %v8613_v33, %v8612_v28  ;;  %v8617_v51 = vrot.slane %v8614_v53, %v4771_v12  ;;  %v8618_v15 = vrot.slane %v8614_v53, %v4768_v11 }
 0x168   :  { %v1689_v47 = vrot.slane %v1681_v13, %v5340_v54  ;;  %v1698_v40 = vcombine.low %v8616_v24, %v8615_v36  ;;  %v8619_v62 = vrot.slane %v8614_v53, %v4793_v25  ;;  %v8620_v38 = vrot.slane %v8614_v53, %v4790_v21  ;;  %2631 = vst [vmem:[#allocation8 + $0xc0] sm:$0xff] %v1663_v44 }
 0x169   :  { %v1699_v48 = vcombine.low %v8618_v15, %v8617_v51  ;;  %v1680_v55 = vcombine.low %v1672_v17, %v1679_v63  ;;  %v1696_v49 = vrot.slane %v1682_v30, %v5340_v54  ;;  %v8621_v41 = vrot.slane %v8614_v53, %v4799_v27 }
 0x16a   :  { %v1715_v32 = vcombine.low %v8620_v38, %v8619_v62  ;;  %v8622_v0 = vrot.slane %v8614_v53, %v4796_v26  ;;  %v1706_v14 = vrot.slane %v1698_v40, %v5340_v54  ;;  %v8624_v13 = vrot.slane %v8623_v45, %v4765_v10 }
 0x16b   :  { %v1713_v23 = vrot.slane %v1699_v48, %v5340_v54  ;;  %v8625_v17 = vrot.slane %v8623_v45, %v4753_v7  ;;  %v8626_v28 = vrot.slane %v8623_v45, %v4771_v12  ;;  %v8627_v33 = vrot.slane %v8623_v45, %v4768_v11  ;;  %2632 = vst [vmem:[#allocation8 + $0xc8] sm:$0xff] %v1680_v55 }
 0x16c   :  { %v1716_v9 = vcombine.low %v8622_v0, %v8621_v41  ;;  %v1697_v31 = vcombine.low %v1689_v47, %v1696_v49  ;;  %v1723_v53 = vrot.slane %v1715_v32, %v5340_v54  ;;  %v8628_v24 = vrot.slane %v8623_v45, %v4793_v25  ;;  %v8632_v41 = vld [vmem:[#allocation26_spill] sm:$0xff] }
 0x16d   :  { %v1732_v63 = vcombine.low %v8625_v17, %v8624_v13  ;;  %v1733_v30 = vcombine.low %v8627_v33, %v8626_v28  ;;  %v8629_v40 = vrot.slane %v8623_v45, %v4790_v21  ;;  %v1714_v15 = vcombine.low %v1706_v14, %v1713_v23 }
 0x16e   :  { %v1730_v36 = vrot.slane %v1716_v9, %v5340_v54  ;;  %v8630_v44 = vrot.slane %v8623_v45, %v4799_v27  ;;  %v8631_v47 = vrot.slane %v8623_v45, %v4796_v26  ;;  %v8633_v0 = vrot.slane %v8632_v41, %v4765_v10  ;;  %2633 = vst [vmem:[#allocation8 + $0xd0] sm:$0xff] %v1697_v31 }
 0x16f   :  { %v1749_v51 = vcombine.low %v8629_v40, %v8628_v24  ;;  %v1740_v48 = vrot.slane %v1732_v63, %v5340_v54  ;;  %v1747_v62 = vrot.slane %v1733_v30, %v5340_v54  ;;  %v8634_v55 = vrot.slane %v8632_v41, %v4753_v7  ;;  %2634 = vst [vmem:[#allocation8 + $0xd8] sm:$0xff] %v1714_v15  ;;  %v8641_v40 = vld [vmem:[#allocation27_spill] sm:$0xff] }
 0x170   :  { %v1750_v49 = vcombine.low %v8631_v47, %v8630_v44  ;;  %v1731_v38 = vcombine.low %v1723_v53, %v1730_v36  ;;  %v8635_v14 = vrot.slane %v8632_v41, %v4771_v12  ;;  %v8636_v23 = vrot.slane %v8632_v41, %v4768_v11 }
 0x171   :  { %v1757_v32 = vrot.slane %v1749_v51, %v5340_v54  ;;  %v1766_v9 = vcombine.low %v8634_v55, %v8633_v0  ;;  %v1748_v45 = vcombine.low %v1740_v48, %v1747_v62  ;;  %v8637_v63 = vrot.slane %v8632_v41, %v4793_v25 }
 0x172   :  { %v1767_v13 = vcombine.low %v8636_v23, %v8635_v14  ;;  %v1764_v17 = vrot.slane %v1750_v49, %v5340_v54  ;;  %v8638_v28 = vrot.slane %v8632_v41, %v4790_v21  ;;  %v8639_v30 = vrot.slane %v8632_v41, %v4799_v27  ;;  %2635 = vst [vmem:[#allocation8 + $0xe0] sm:$0xff] %v1731_v38 }
 0x173   :  { %v8640_v53 = vrot.slane %v8632_v41, %v4796_v26  ;;  %v1774_v31 = vrot.slane %v1766_v9, %v5340_v54  ;;  %v8642_v51 = vrot.slane %v8641_v40, %v4765_v10  ;;  %v8643_v48 = vrot.slane %v8641_v40, %v4753_v7  ;;  %2636 = vst [vmem:[#allocation8 + $0xe8] sm:$0xff] %v1748_v45 }
 0x174   :  { %v1783_v33 = vcombine.low %v8638_v28, %v8637_v63  ;;  %v1781_v24 = vrot.slane %v1767_v13, %v5340_v54  ;;  %v8644_v44 = vrot.slane %v8641_v40, %v4771_v12  ;;  %v8645_v47 = vrot.slane %v8641_v40, %v4768_v11 }
 0x175   :  { %v1784_v36 = vcombine.low %v8640_v53, %v8639_v30  ;;  %v1800_v62 = vcombine.low %v8643_v48, %v8642_v51  ;;  %v1765_v15 = vcombine.low %v1757_v32, %v1764_v17  ;;  %v8646_v55 = vrot.slane %v8641_v40, %v4793_v25  ;;  %v8650_v30 = vld [vmem:[#allocation28_spill] sm:$0xff] }
 0x176   :  { %v1801_v49 = vcombine.low %v8645_v47, %v8644_v44  ;;  %v1791_v41 = vrot.slane %v1783_v33, %v5340_v54  ;;  %v8647_v9 = vrot.slane %v8641_v40, %v4790_v21  ;;  %v1782_v23 = vcombine.low %v1774_v31, %v1781_v24 }
 0x177   :  { %v1798_v0 = vrot.slane %v1784_v36, %v5340_v54  ;;  %v1808_v13 = vrot.slane %v1800_v62, %v5340_v54  ;;  %v8648_v38 = vrot.slane %v8641_v40, %v4799_v27  ;;  %v8649_v32 = vrot.slane %v8641_v40, %v4796_v26  ;;  %2637 = vst [vmem:[#allocation8 + $0xf0] sm:$0xff] %v1765_v15 }
 0x178   :  { %v1817_v14 = vcombine.low %v8647_v9, %v8646_v55  ;;  %v1815_v63 = vrot.slane %v1801_v49, %v5340_v54  ;;  %v8651_v53 = vrot.slane %v8650_v30, %v4765_v10  ;;  %v8652_v45 = vrot.slane %v8650_v30, %v4753_v7  ;;  %2638 = vst [vmem:[#allocation8 + $0xf8] sm:$0xff] %v1782_v23  ;;  %v8659_v9 = vld [vmem:[#allocation29_spill] sm:$0xff] }
 0x179   :  { %v1818_v17 = vcombine.low %v8649_v32, %v8648_v38  ;;  %v1799_v28 = vcombine.low %v1791_v41, %v1798_v0  ;;  %v8653_v31 = vrot.slane %v8650_v30, %v4771_v12  ;;  %v8654_v24 = vrot.slane %v8650_v30, %v4768_v11 }
 0x17a   :  { %v1825_v33 = vrot.slane %v1817_v14, %v5340_v54  ;;  %v1834_v36 = vcombine.low %v8652_v45, %v8651_v53  ;;  %v1816_v40 = vcombine.low %v1808_v13, %v1815_v63  ;;  %v8655_v62 = vrot.slane %v8650_v30, %v4793_v25 }
 0x17b   :  { %v1835_v51 = vcombine.low %v8654_v24, %v8653_v31  ;;  %v1832_v48 = vrot.slane %v1818_v17, %v5340_v54  ;;  %v8656_v44 = vrot.slane %v8650_v30, %v4790_v21  ;;  %v8657_v49 = vrot.slane %v8650_v30, %v4799_v27  ;;  %2639 = vst [vmem:[#allocation8 + $0x100] sm:$0xff] %v1799_v28 }
 0x17c   :  { %v8658_v41 = vrot.slane %v8650_v30, %v4796_v26  ;;  %v1842_v15 = vrot.slane %v1834_v36, %v5340_v54  ;;  %v8660_v14 = vrot.slane %v8659_v9, %v4765_v10  ;;  %v8661_v13 = vrot.slane %v8659_v9, %v4753_v7  ;;  %2640 = vst [vmem:[#allocation8 + $0x108] sm:$0xff] %v1816_v40 }
 0x17d   :  { %v1851_v47 = vcombine.low %v8656_v44, %v8655_v62  ;;  %v1849_v55 = vrot.slane %v1835_v51, %v5340_v54  ;;  %v8662_v38 = vrot.slane %v8659_v9, %v4771_v12  ;;  %v8663_v32 = vrot.slane %v8659_v9, %v4768_v11 }
 0x17e   :  { %v1852_v0 = vcombine.low %v8658_v41, %v8657_v49  ;;  %v1868_v63 = vcombine.low %v8661_v13, %v8660_v14  ;;  %v1833_v23 = vcombine.low %v1825_v33, %v1832_v48  ;;  %v8664_v45 = vrot.slane %v8659_v9, %v4793_v25  ;;  %v8668_v49 = vld [vmem:[#allocation30_spill] sm:$0xff] }
 0x17f   :  { %v1869_v17 = vcombine.low %v8663_v32, %v8662_v38  ;;  %v1859_v30 = vrot.slane %v1851_v47, %v5340_v54  ;;  %v8665_v36 = vrot.slane %v8659_v9, %v4790_v21  ;;  %v1850_v24 = vcombine.low %v1842_v15, %v1849_v55 }
 0x180   :  { %v1866_v53 = vrot.slane %v1852_v0, %v5340_v54  ;;  %v1876_v51 = vrot.slane %v1868_v63, %v5340_v54  ;;  %v8666_v28 = vrot.slane %v8659_v9, %v4799_v27  ;;  %v8667_v33 = vrot.slane %v8659_v9, %v4796_v26  ;;  %2641 = vst [vmem:[#allocation8 + $0x110] sm:$0xff] %v1833_v23 }
 0x181   :  { %v1885_v31 = vcombine.low %v8665_v36, %v8664_v45  ;;  %v1883_v62 = vrot.slane %v1869_v17, %v5340_v54  ;;  %v8669_v41 = vrot.slane %v8668_v49, %v4765_v10  ;;  %v8670_v40 = vrot.slane %v8668_v49, %v4753_v7  ;;  %2642 = vst [vmem:[#allocation8 + $0x118] sm:$0xff] %v1850_v24 }
 0x182   :  { %v1886_v48 = vcombine.low %v8667_v33, %v8666_v28  ;;  %v1867_v44 = vcombine.low %v1859_v30, %v1866_v53  ;;  %v8671_v15 = vrot.slane %v8668_v49, %v4771_v12  ;;  %v8672_v55 = vrot.slane %v8668_v49, %v4768_v11 }
 0x183   :  { %v1893_v47 = vrot.slane %v1885_v31, %v5340_v54  ;;  %v1902_v0 = vcombine.low %v8670_v40, %v8669_v41  ;;  %v1884_v9 = vcombine.low %v1876_v51, %v1883_v62  ;;  %v8673_v63 = vrot.slane %v8668_v49, %v4793_v25 }
 0x184   :  { %v1903_v14 = vcombine.low %v8672_v55, %v8671_v15  ;;  %v1900_v13 = vrot.slane %v1886_v48, %v5340_v54  ;;  %v8674_v38 = vrot.slane %v8668_v49, %v4790_v21  ;;  %v8675_v17 = vrot.slane %v8668_v49, %v4799_v27  ;;  %2643 = vst [vmem:[#allocation8 + $0x120] sm:$0xff] %v1867_v44 }
 0x185   :  { %v8676_v30 = vrot.slane %v8668_v49, %v4796_v26  ;;  %v1910_v23 = vrot.slane %v1902_v0, %v5340_v54  ;;  %v8677_v36 = vrot.slane %v5688_v29, %v4765_v10  ;;  %v8678_v31 = vrot.slane %v5688_v29, %v4753_v7  ;;  %2644 = vst [vmem:[#allocation8 + $0x128] sm:$0xff] %v1884_v9 }
 0x186   :  { %v1919_v32 = vcombine.low %v8674_v38, %v8673_v63  ;;  %v1917_v45 = vrot.slane %v1903_v14, %v5340_v54  ;;  %v8679_v62 = vrot.slane %v5688_v29, %v4771_v12  ;;  %v8680_v28 = vrot.slane %v5688_v29, %v4768_v11 }
 0x187   :  { %v1920_v53 = vcombine.low %v8676_v30, %v8675_v17  ;;  %v1936_v51 = vcombine.low %v8678_v31, %v8677_v36  ;;  %v1901_v24 = vcombine.low %v1893_v47, %v1900_v13  ;;  %v8681_v41 = vrot.slane %v5688_v29, %v4793_v25 }
 0x188   :  { %v1937_v33 = vcombine.low %v8680_v28, %v8679_v62  ;;  %v1927_v48 = vrot.slane %v1919_v32, %v5340_v54  ;;  %v8682_v40 = vrot.slane %v5688_v29, %v4790_v21  ;;  %v1918_v15 = vcombine.low %v1910_v23, %v1917_v45 }
 0x189   :  { %v1934_v49 = vrot.slane %v1920_v53, %v5340_v54  ;;  %v1944_v55 = vrot.slane %v1936_v51, %v5340_v54  ;;  %v8683_v44 = vrot.slane %v5688_v29, %v4796_v26  ;;  %v1970_v9 = vcombine.low %v851_v5, %v855_v61  ;;  %2645 = vst [vmem:[#allocation8 + $0x130] sm:$0xff] %v1901_v24 }
 0x18a   :  { %v1953_v0 = vcombine.low %v8682_v40, %v8681_v41  ;;  %v1951_v14 = vrot.slane %v1937_v33, %v5340_v54  ;;  %v1971_v38 = vcombine.low %v859_v57, %v863_v3  ;;  %v1987_v32 = vcombine.low %v867_v20, %v871_v2  ;;  %2646 = vst [vmem:[#allocation8 + $0x138] sm:$0xff] %v1918_v15 }
 0x18b   :  { %v1954_v47 = vcombine.low %v8683_v44, %v847_v60  ;;  %v1935_v13 = vcombine.low %v1927_v48, %v1934_v49  ;;  %v1988_v5 = vcombine.low %v875_v34, %v879_v42  ;;  %v1978_v61 = vrot.slane %v1970_v9, %v5340_v54 }
 0x18c   :  { %v1961_v63 = vrot.slane %v1953_v0, %v5340_v54  ;;  %v1952_v29 = vcombine.low %v1944_v55, %v1951_v14  ;;  %v1985_v57 = vrot.slane %v1971_v38, %v5340_v54  ;;  %v8684_v3 = vrot.slane %v6946_v43, %v4753_v7 }
 0x18d   :  { %v1968_v60 = vrot.slane %v1954_v47, %v5340_v54  ;;  %v8685_v20 = vrot.slane %v6946_v43, %v4771_v12  ;;  %v8686_v2 = vrot.slane %v6946_v43, %v4768_v11  ;;  %2647 = vst [vmem:[#allocation8 + $0x140] sm:$0xff] %v1935_v13  ;;  %v1995_v42 = vrot.slane %v1987_v32, %v5340_v54 }
 0x18e   :  { %v2004_v17 = vcombine.low %v8684_v3, %v887_v37  ;;  %v2002_v30 = vrot.slane %v1988_v5, %v5340_v54  ;;  %v8687_v53 = vrot.slane %v6946_v43, %v4793_v25  ;;  %v8688_v23 = vrot.slane %v6946_v43, %v4790_v21  ;;  %2648 = vst [vmem:[#allocation8 + $0x148] sm:$0xff] %v1952_v29 }
 0x18f   :  { %v2005_v50 = vcombine.low %v8686_v2, %v8685_v20  ;;  %v1969_v34 = vcombine.low %v1961_v63, %v1968_v60  ;;  %v1986_v45 = vcombine.low %v1978_v61, %v1985_v57  ;;  %v8689_v51 = vrot.slane %v6946_v43, %v4799_v27 }
 0x190   :  { %v2021_v37 = vcombine.low %v8688_v23, %v8687_v53  ;;  %v2012_v36 = vrot.slane %v2004_v17, %v5340_v54  ;;  %v8690_v62 = vrot.slane %v6946_v43, %v4796_v26  ;;  %v2003_v33 = vcombine.low %v1995_v42, %v2002_v30 }
 0x191   :  { %v2019_v31 = vrot.slane %v2005_v50, %v5340_v54  ;;  %v8691_v48 = vrot.slane %v6952_v18, %v4765_v10  ;;  %v8692_v49 = vrot.slane %v6952_v18, %v4753_v7  ;;  %v8693_v40 = vrot.slane %v6952_v18, %v4771_v12  ;;  %2649 = vst [vmem:[#allocation8 + $0x150] sm:$0xff] %v1969_v34 }
 0x192   :  { %v2022_v28 = vcombine.low %v8690_v62, %v8689_v51  ;;  %v2029_v24 = vrot.slane %v2021_v37, %v5340_v54  ;;  %v8694_v0 = vrot.slane %v6952_v18, %v4768_v11  ;;  %v8695_v14 = vrot.slane %v6952_v18, %v4793_v25  ;;  %2650 = vst [vmem:[#allocation8 + $0x158] sm:$0xff] %v1986_v45 }
 0x193   :  { %v2038_v41 = vcombine.low %v8692_v49, %v8691_v48  ;;  %v2020_v43 = vcombine.low %v2012_v36, %v2019_v31  ;;  %v8696_v44 = vrot.slane %v6952_v18, %v4790_v21  ;;  %v8697_v13 = vrot.slane %v6952_v18, %v4799_v27  ;;  %2651 = vst [vmem:[#allocation8 + $0x160] sm:$0xff] %v2003_v33 }
 0x194   :  { %v2039_v15 = vcombine.low %v8694_v0, %v8693_v40  ;;  %v2036_v55 = vrot.slane %v2022_v28, %v5340_v54  ;;  %v8698_v63 = vrot.slane %v6952_v18, %v4796_v26  ;;  %v8699_v60 = vrot.slane %v6966_v58, %v4765_v10 }
 0x195   :  { %v2055_v47 = vcombine.low %v8696_v44, %v8695_v14  ;;  %v2046_v38 = vrot.slane %v2038_v41, %v5340_v54  ;;  %v8700_v32 = vrot.slane %v6966_v58, %v4753_v7  ;;  %v8701_v61 = vrot.slane %v6966_v58, %v4771_v12  ;;  %2652 = vst [vmem:[#allocation8 + $0x168] sm:$0xff] %v2020_v43 }
 0x196   :  { %v2056_v9 = vcombine.low %v8698_v63, %v8697_v13  ;;  %v2053_v29 = vrot.slane %v2039_v15, %v5340_v54  ;;  %v8702_v57 = vrot.slane %v6966_v58, %v4768_v11  ;;  %v2037_v3 = vcombine.low %v2029_v24, %v2036_v55 }
 0x197   :  { %v2072_v5 = vcombine.low %v8700_v32, %v8699_v60  ;;  %v2063_v17 = vrot.slane %v2055_v47, %v5340_v54  ;;  %v8703_v2 = vrot.slane %v6966_v58, %v4793_v25  ;;  %v8704_v50 = vrot.slane %v6966_v58, %v4790_v21 }
 0x198   :  { %v2073_v18 = vcombine.low %v8702_v57, %v8701_v61  ;;  %v2070_v20 = vrot.slane %v2056_v9, %v5340_v54  ;;  %v2054_v42 = vcombine.low %v2046_v38, %v2053_v29  ;;  %v8705_v23 = vrot.slane %v6966_v58, %v4799_v27  ;;  %2653 = vst [vmem:[#allocation8 + $0x170] sm:$0xff] %v2037_v3 }
 0x199   :  { %v2089_v34 = vcombine.low %v8704_v50, %v8703_v2  ;;  %v2080_v30 = vrot.slane %v2072_v5, %v5340_v54  ;;  %v8706_v37 = vrot.slane %v6966_v58, %v4796_v26  ;;  %v8707_v51 = vrot.slane %v6984_v1, %v4765_v10 }
 0x19a   :  { %v2087_v53 = vrot.slane %v2073_v18, %v5340_v54  ;;  %v2071_v36 = vcombine.low %v2063_v17, %v2070_v20  ;;  %v8708_v62 = vrot.slane %v6984_v1, %v4753_v7  ;;  %v8709_v33 = vrot.slane %v6984_v1, %v4771_v12  ;;  %2654 = vst [vmem:[#allocation8 + $0x178] sm:$0xff] %v2054_v42 }
 0x19b   :  { %v2090_v45 = vcombine.low %v8706_v37, %v8705_v23  ;;  %v2097_v31 = vrot.slane %v2089_v34, %v5340_v54  ;;  %v8710_v24 = vrot.slane %v6984_v1, %v4768_v11  ;;  %v8711_v41 = vrot.slane %v6984_v1, %v4793_v25 }
 0x19c   :  { %v2106_v28 = vcombine.low %v8708_v62, %v8707_v51  ;;  %v2088_v58 = vcombine.low %v2080_v30, %v2087_v53  ;;  %v8712_v40 = vrot.slane %v6984_v1, %v4790_v21  ;;  %v8713_v15 = vrot.slane %v6984_v1, %v4799_v27  ;;  %2655 = vst [vmem:[#allocation8 + $0x180] sm:$0xff] %v2071_v36 }
 0x19d   :  { %v2107_v48 = vcombine.low %v8710_v24, %v8709_v33  ;;  %v2104_v49 = vrot.slane %v2090_v45, %v5340_v54  ;;  %v8714_v43 = vrot.slane %v6984_v1, %v4796_v26  ;;  %v8715_v47 = vrot.slane %v7002_v59, %v4765_v10 }
 0x19e   :  { %v2123_v0 = vcombine.low %v8712_v40, %v8711_v41  ;;  %v2114_v14 = vrot.slane %v2106_v28, %v5340_v54  ;;  %v8716_v13 = vrot.slane %v7002_v59, %v4753_v7  ;;  %v8717_v9 = vrot.slane %v7002_v59, %v4771_v12  ;;  %2656 = vst [vmem:[#allocation8 + $0x188] sm:$0xff] %v2088_v58 }
 0x19f   :  { %v2124_v55 = vcombine.low %v8714_v43, %v8713_v15  ;;  %v2121_v44 = vrot.slane %v2107_v48, %v5340_v54  ;;  %v8718_v38 = vrot.slane %v7002_v59, %v4768_v11  ;;  %v2105_v29 = vcombine.low %v2097_v31, %v2104_v49 }
 0x1a0   :  { %v2140_v63 = vcombine.low %v8716_v13, %v8715_v47  ;;  %v2131_v60 = vrot.slane %v2123_v0, %v5340_v54  ;;  %v8719_v5 = vrot.slane %v7002_v59, %v4793_v25  ;;  %v8720_v61 = vrot.slane %v7002_v59, %v4790_v21 }
 0x1a1   :  { %v2141_v1 = vcombine.low %v8718_v38, %v8717_v9  ;;  %v2138_v32 = vrot.slane %v2124_v55, %v5340_v54  ;;  %v2122_v18 = vcombine.low %v2114_v14, %v2121_v44  ;;  %v8721_v20 = vrot.slane %v7002_v59, %v4799_v27  ;;  %2657 = vst [vmem:[#allocation8 + $0x190] sm:$0xff] %v2105_v29 }
 0x1a2   :  { %v2157_v57 = vcombine.low %v8720_v61, %v8719_v5  ;;  %v2148_v3 = vrot.slane %v2140_v63, %v5340_v54  ;;  %v8722_v2 = vrot.slane %v7002_v59, %v4796_v26  ;;  %v8723_v30 = vrot.slane %v7020_v39, %v4765_v10 }
 0x1a3   :  { %v2155_v17 = vrot.slane %v2141_v1, %v5340_v54  ;;  %v2139_v34 = vcombine.low %v2131_v60, %v2138_v32  ;;  %v8724_v53 = vrot.slane %v7020_v39, %v4753_v7  ;;  %v8725_v37 = vrot.slane %v7020_v39, %v4771_v12  ;;  %2658 = vst [vmem:[#allocation8 + $0x198] sm:$0xff] %v2122_v18 }
 0x1a4   :  { %v2158_v50 = vcombine.low %v8722_v2, %v8721_v20  ;;  %v2165_v42 = vrot.slane %v2157_v57, %v5340_v54  ;;  %v8726_v45 = vrot.slane %v7020_v39, %v4768_v11  ;;  %v8727_v51 = vrot.slane %v7020_v39, %v4793_v25 }
 0x1a5   :  { %v2174_v23 = vcombine.low %v8724_v53, %v8723_v30  ;;  %v2156_v59 = vcombine.low %v2148_v3, %v2155_v17  ;;  %v8728_v62 = vrot.slane %v7020_v39, %v4790_v21  ;;  %v8729_v33 = vrot.slane %v7020_v39, %v4799_v27  ;;  %2659 = vst [vmem:[#allocation8 + $0x1a0] sm:$0xff] %v2139_v34 }
 0x1a6   :  { %v2175_v36 = vcombine.low %v8726_v45, %v8725_v37  ;;  %v2172_v31 = vrot.slane %v2158_v50, %v5340_v54  ;;  %v8730_v24 = vrot.slane %v7020_v39, %v4796_v26  ;;  %v8731_v41 = vrot.slane %v7038_v19, %v4765_v10 }
 0x1a7   :  { %v2191_v28 = vcombine.low %v8728_v62, %v8727_v51  ;;  %v2182_v58 = vrot.slane %v2174_v23, %v5340_v54  ;;  %v8732_v40 = vrot.slane %v7038_v19, %v4753_v7  ;;  %v8733_v15 = vrot.slane %v7038_v19, %v4771_v12  ;;  %2660 = vst [vmem:[#allocation8 + $0x1a8] sm:$0xff] %v2156_v59 }
 0x1a8   :  { %v2192_v48 = vcombine.low %v8730_v24, %v8729_v33  ;;  %v2189_v49 = vrot.slane %v2175_v36, %v5340_v54  ;;  %v8734_v43 = vrot.slane %v7038_v19, %v4768_v11  ;;  %v2173_v55 = vcombine.low %v2165_v42, %v2172_v31 }
 0x1a9   :  { %v2208_v0 = vcombine.low %v8732_v40, %v8731_v41  ;;  %v2199_v14 = vrot.slane %v2191_v28, %v5340_v54  ;;  %v8735_v47 = vrot.slane %v7038_v19, %v4793_v25  ;;  %v8736_v13 = vrot.slane %v7038_v19, %v4790_v21 }
 0x1aa   :  { %v2209_v39 = vcombine.low %v8734_v43, %v8733_v15  ;;  %v2206_v44 = vrot.slane %v2192_v48, %v5340_v54  ;;  %v2190_v9 = vcombine.low %v2182_v58, %v2189_v49  ;;  %v8737_v29 = vrot.slane %v7038_v19, %v4799_v27  ;;  %2661 = vst [vmem:[#allocation8 + $0x1b0] sm:$0xff] %v2173_v55 }
 0x1ab   :  { %v2225_v63 = vcombine.low %v8736_v13, %v8735_v47  ;;  %v2216_v38 = vrot.slane %v2208_v0, %v5340_v54  ;;  %v8738_v60 = vrot.slane %v7038_v19, %v4796_v26  ;;  %v8739_v57 = vrot.slane %v7056_v16, %v4765_v10 }
 0x1ac   :  { %v2223_v1 = vrot.slane %v2209_v39, %v5340_v54  ;;  %v2207_v5 = vcombine.low %v2199_v14, %v2206_v44  ;;  %v8740_v18 = vrot.slane %v7056_v16, %v4753_v7  ;;  %v8741_v17 = vrot.slane %v7056_v16, %v4771_v12  ;;  %2662 = vst [vmem:[#allocation8 + $0x1b8] sm:$0xff] %v2190_v9 }
 0x1ad   :  { %v2226_v32 = vcombine.low %v8738_v60, %v8737_v29  ;;  %v2233_v61 = vrot.slane %v2225_v63, %v5340_v54  ;;  %v8742_v20 = vrot.slane %v7056_v16, %v4768_v11  ;;  %v8743_v34 = vrot.slane %v7056_v16, %v4793_v25 }
 0x1ae   :  { %v2242_v3 = vcombine.low %v8740_v18, %v8739_v57  ;;  %v2224_v19 = vcombine.low %v2216_v38, %v2223_v1  ;;  %v8744_v42 = vrot.slane %v7056_v16, %v4790_v21  ;;  %v8745_v53 = vrot.slane %v7056_v16, %v4799_v27  ;;  %2663 = vst [vmem:[#allocation8 + $0x1c0] sm:$0xff] %v2207_v5 }
 0x1af   :  { %v2243_v2 = vcombine.low %v8742_v20, %v8741_v17  ;;  %v2240_v50 = vrot.slane %v2226_v32, %v5340_v54  ;;  %v8746_v23 = vrot.slane %v7056_v16, %v4796_v26  ;;  %v8747_v59 = vrot.slane %v7074_v6, %v4765_v10 }
 0x1b0   :  { %v2259_v30 = vcombine.low %v8744_v42, %v8743_v34  ;;  %v2250_v45 = vrot.slane %v2242_v3, %v5340_v54  ;;  %v8748_v31 = vrot.slane %v7074_v6, %v4753_v7  ;;  %v8749_v62 = vrot.slane %v7074_v6, %v4771_v12  ;;  %2664 = vst [vmem:[#allocation8 + $0x1c8] sm:$0xff] %v2224_v19 }
 0x1b1   :  { %v2260_v37 = vcombine.low %v8746_v23, %v8745_v53  ;;  %v2257_v36 = vrot.slane %v2243_v2, %v5340_v54  ;;  %v8750_v28 = vrot.slane %v7074_v6, %v4768_v11  ;;  %v2241_v33 = vcombine.low %v2233_v61, %v2240_v50 }
 0x1b2   :  { %v2276_v51 = vcombine.low %v8748_v31, %v8747_v59  ;;  %v2267_v24 = vrot.slane %v2259_v30, %v5340_v54  ;;  %v8751_v58 = vrot.slane %v7074_v6, %v4793_v25  ;;  %v8752_v49 = vrot.slane %v7074_v6, %v4790_v21 }
 0x1b3   :  { %v2277_v16 = vcombine.low %v8750_v28, %v8749_v62  ;;  %v2274_v48 = vrot.slane %v2260_v37, %v5340_v54  ;;  %v2258_v40 = vcombine.low %v2250_v45, %v2257_v36  ;;  %v8753_v43 = vrot.slane %v7074_v6, %v4799_v27  ;;  %2665 = vst [vmem:[#allocation8 + $0x1d0] sm:$0xff] %v2241_v33 }
 0x1b4   :  { %v2293_v41 = vcombine.low %v8752_v49, %v8751_v58  ;;  %v2284_v0 = vrot.slane %v2276_v51, %v5340_v54  ;;  %v8754_v39 = vrot.slane %v7074_v6, %v4796_v26  ;;  %v8755_v47 = vrot.slane %v7092_v8, %v4765_v10 }
 0x1b5   :  { %v2291_v15 = vrot.slane %v2277_v16, %v5340_v54  ;;  %v2275_v14 = vcombine.low %v2267_v24, %v2274_v48  ;;  %v8756_v13 = vrot.slane %v7092_v8, %v4753_v7  ;;  %v8757_v9 = vrot.slane %v7092_v8, %v4771_v12  ;;  %2666 = vst [vmem:[#allocation8 + $0x1d8] sm:$0xff] %v2258_v40 }
 0x1b6   :  { %v2294_v55 = vcombine.low %v8754_v39, %v8753_v43  ;;  %v2301_v44 = vrot.slane %v2293_v41, %v5340_v54  ;;  %v8758_v38 = vrot.slane %v7092_v8, %v4768_v11  ;;  %v8759_v60 = vrot.slane %v7092_v8, %v4793_v25 }
 0x1b7   :  { %v2310_v63 = vcombine.low %v8756_v13, %v8755_v47  ;;  %v2292_v6 = vcombine.low %v2284_v0, %v2291_v15  ;;  %v8760_v32 = vrot.slane %v7092_v8, %v4790_v21  ;;  %v8761_v61 = vrot.slane %v7092_v8, %v4799_v27  ;;  %2667 = vst [vmem:[#allocation8 + $0x1e0] sm:$0xff] %v2275_v14 }
 0x1b8   :  { %v2311_v1 = vcombine.low %v8758_v38, %v8757_v9  ;;  %v2308_v29 = vrot.slane %v2294_v55, %v5340_v54  ;;  %v8762_v57 = vrot.slane %v7092_v8, %v4796_v26  ;;  %v8763_v20 = vrot.slane %v7110_v52, %v4765_v10 }
 0x1b9   :  { %v2327_v5 = vcombine.low %v8760_v32, %v8759_v60  ;;  %v2318_v3 = vrot.slane %v2310_v63, %v5340_v54  ;;  %v8764_v2 = vrot.slane %v7110_v52, %v4753_v7  ;;  %v8765_v50 = vrot.slane %v7110_v52, %v4771_v12  ;;  %2668 = vst [vmem:[#allocation8 + $0x1e8] sm:$0xff] %v2292_v6 }
 0x1ba   :  { %v2328_v18 = vcombine.low %v8762_v57, %v8761_v61  ;;  %v2325_v17 = vrot.slane %v2311_v1, %v5340_v54  ;;  %v8766_v34 = vrot.slane %v7110_v52, %v4768_v11  ;;  %v2309_v42 = vcombine.low %v2301_v44, %v2308_v29 }
 0x1bb   :  { %v2344_v19 = vcombine.low %v8764_v2, %v8763_v20  ;;  %v2335_v30 = vrot.slane %v2327_v5, %v5340_v54  ;;  %v8767_v23 = vrot.slane %v7110_v52, %v4793_v25  ;;  %v8768_v37 = vrot.slane %v7110_v52, %v4790_v21 }
 0x1bc   :  { %v2345_v8 = vcombine.low %v8766_v34, %v8765_v50  ;;  %v2342_v53 = vrot.slane %v2328_v18, %v5340_v54  ;;  %v2326_v36 = vcombine.low %v2318_v3, %v2325_v17  ;;  %v8769_v51 = vrot.slane %v7110_v52, %v4799_v27  ;;  %2669 = vst [vmem:[#allocation8 + $0x1f0] sm:$0xff] %v2309_v42 }
 0x1bd   :  { %v2361_v45 = vcombine.low %v8768_v37, %v8767_v23  ;;  %v2352_v59 = vrot.slane %v2344_v19, %v5340_v54  ;;  %v8770_v62 = vrot.slane %v7110_v52, %v4796_v26  ;;  %v8771_v24 = vrot.slane %v7128_v35, %v4765_v10 }
 0x1be   :  { %v2359_v31 = vrot.slane %v2345_v8, %v5340_v54  ;;  %v2343_v16 = vcombine.low %v2335_v30, %v2342_v53  ;;  %v8772_v48 = vrot.slane %v7128_v35, %v4753_v7  ;;  %v8773_v49 = vrot.slane %v7128_v35, %v4771_v12  ;;  %2670 = vst [vmem:[#allocation8 + $0x1f8] sm:$0xff] %v2326_v36 }
 0x1bf   :  { %v2362_v28 = vcombine.low %v8770_v62, %v8769_v51  ;;  %v2369_v33 = vrot.slane %v2361_v45, %v5340_v54  ;;  %v8774_v41 = vrot.slane %v7128_v35, %v4768_v11  ;;  %v8775_v15 = vrot.slane %v7128_v35, %v4793_v25 }
 0x1c0   :  { %v2378_v58 = vcombine.low %v8772_v48, %v8771_v24  ;;  %v2360_v52 = vcombine.low %v2352_v59, %v2359_v31  ;;  %v8776_v43 = vrot.slane %v7128_v35, %v4790_v21  ;;  %v8777_v55 = vrot.slane %v7128_v35, %v4799_v27  ;;  %2671 = vst [vmem:[#allocation8 + $0x200] sm:$0xff] %v2343_v16 }
 0x1c1   :  { %v2379_v40 = vcombine.low %v8774_v41, %v8773_v49  ;;  %v2376_v0 = vrot.slane %v2362_v28, %v5340_v54  ;;  %v8778_v14 = vrot.slane %v7128_v35, %v4796_v26  ;;  %v8779_v63 = vrot.slane %v7146_v46, %v4765_v10 }
 0x1c2   :  { %v2395_v39 = vcombine.low %v8776_v43, %v8775_v15  ;;  %v2386_v47 = vrot.slane %v2378_v58, %v5340_v54  ;;  %v8780_v9 = vrot.slane %v7146_v46, %v4753_v7  ;;  %v8781_v1 = vrot.slane %v7146_v46, %v4771_v12  ;;  %2672 = vst [vmem:[#allocation8 + $0x208] sm:$0xff] %v2360_v52 }
 0x1c3   :  { %v2396_v44 = vcombine.low %v8778_v14, %v8777_v55  ;;  %v2393_v13 = vrot.slane %v2379_v40, %v5340_v54  ;;  %v8782_v6 = vrot.slane %v7146_v46, %v4768_v11  ;;  %v2377_v29 = vcombine.low %v2369_v33, %v2376_v0 }
 0x1c4   :  { %v2412_v38 = vcombine.low %v8780_v9, %v8779_v63  ;;  %v2403_v60 = vrot.slane %v2395_v39, %v5340_v54  ;;  %v8783_v5 = vrot.slane %v7146_v46, %v4793_v25  ;;  %v8784_v61 = vrot.slane %v7146_v46, %v4790_v21 }
 0x1c5   :  { %v2413_v35 = vcombine.low %v8782_v6, %v8781_v1  ;;  %v2410_v32 = vrot.slane %v2396_v44, %v5340_v54  ;;  %v2394_v18 = vcombine.low %v2386_v47, %v2393_v13  ;;  %v8785_v20 = vrot.slane %v7146_v46, %v4799_v27  ;;  %2673 = vst [vmem:[#allocation8 + $0x210] sm:$0xff] %v2377_v29 }
 0x1c6   :  { %v2429_v57 = vcombine.low %v8784_v61, %v8783_v5  ;;  %v2420_v3 = vrot.slane %v2412_v38, %v5340_v54  ;;  %v8786_v2 = vrot.slane %v7146_v46, %v4796_v26  ;;  %v8787_v8 = vrot.slane %v7164_v22, %v4765_v10 }
 0x1c7   :  { %v2427_v17 = vrot.slane %v2413_v35, %v5340_v54  ;;  %v2411_v50 = vcombine.low %v2403_v60, %v2410_v32  ;;  %v8788_v42 = vrot.slane %v7164_v22, %v4753_v7  ;;  %v8789_v53 = vrot.slane %v7164_v22, %v4771_v12  ;;  %2674 = vst [vmem:[#allocation8 + $0x218] sm:$0xff] %v2394_v18 }
 0x1c8   :  { %v2430_v19 = vcombine.low %v8786_v2, %v8785_v20  ;;  %v2437_v34 = vrot.slane %v2429_v57, %v5340_v54  ;;  %v8790_v23 = vrot.slane %v7164_v22, %v4768_v11  ;;  %v8791_v36 = vrot.slane %v7164_v22, %v4793_v25 }
 0x1c9   :  { %v2446_v30 = vcombine.low %v8788_v42, %v8787_v8  ;;  %v2428_v46 = vcombine.low %v2420_v3, %v2427_v17  ;;  %v8792_v59 = vrot.slane %v7164_v22, %v4790_v21  ;;  %v8793_v51 = vrot.slane %v7164_v22, %v4799_v27  ;;  %2675 = vst [vmem:[#allocation8 + $0x220] sm:$0xff] %v2411_v50 }
 0x1ca   :  { %v2447_v37 = vcombine.low %v8790_v23, %v8789_v53  ;;  %v2444_v45 = vrot.slane %v2430_v19, %v5340_v54  ;;  %v8794_v62 = vrot.slane %v7164_v22, %v4796_v26  ;;  %v8795_v24 = vrot.slane %v7182_v56, %v4765_v10 }
 0x1cb   :  { %v2463_v31 = vcombine.low %v8792_v59, %v8791_v36  ;;  %v2454_v16 = vrot.slane %v2446_v30, %v5340_v54  ;;  %v8796_v48 = vrot.slane %v7182_v56, %v4753_v7  ;;  %v8797_v49 = vrot.slane %v7182_v56, %v4771_v12  ;;  %2676 = vst [vmem:[#allocation8 + $0x228] sm:$0xff] %v2428_v46 }
 0x1cc   :  { %v2464_v28 = vcombine.low %v8794_v62, %v8793_v51  ;;  %v2461_v33 = vrot.slane %v2447_v37, %v5340_v54  ;;  %v8798_v41 = vrot.slane %v7182_v56, %v4768_v11  ;;  %v2445_v40 = vcombine.low %v2437_v34, %v2444_v45 }
 0x1cd   :  { %v2480_v58 = vcombine.low %v8796_v48, %v8795_v24  ;;  %v2471_v52 = vrot.slane %v2463_v31, %v5340_v54  ;;  %v8799_v15 = vrot.slane %v7182_v56, %v4793_v25  ;;  %v8800_v43 = vrot.slane %v7182_v56, %v4790_v21 }
 0x1ce   :  { %v2481_v22 = vcombine.low %v8798_v41, %v8797_v49  ;;  %v2478_v0 = vrot.slane %v2464_v28, %v5340_v54  ;;  %v2462_v55 = vcombine.low %v2454_v16, %v2461_v33  ;;  %v8801_v47 = vrot.slane %v7182_v56, %v4799_v27  ;;  %2677 = vst [vmem:[#allocation8 + $0x230] sm:$0xff] %v2445_v40 }
 0x1cf   :  { %v2497_v39 = vcombine.low %v8800_v43, %v8799_v15  ;;  %v2488_v14 = vrot.slane %v2480_v58, %v5340_v54  ;;  %v8802_v13 = vrot.slane %v7182_v56, %v4796_v26  ;;  %v8803_v1 = vrot.slane %v7200_v4, %v4765_v10 }
 0x1d0   :  { %v2495_v44 = vrot.slane %v2481_v22, %v5340_v54  ;;  %v2479_v9 = vcombine.low %v2471_v52, %v2478_v0  ;;  %v8804_v6 = vrot.slane %v7200_v4, %v4753_v7  ;;  %v8805_v29 = vrot.slane %v7200_v4, %v4771_v12  ;;  %2678 = vst [vmem:[#allocation8 + $0x238] sm:$0xff] %v2462_v55 }
 0x1d1   :  { %v2498_v63 = vcombine.low %v8802_v13, %v8801_v47  ;;  %v2505_v38 = vrot.slane %v2497_v39, %v5340_v54  ;;  %v8806_v60 = vrot.slane %v7200_v4, %v4768_v11  ;;  %v8807_v61 = vrot.slane %v7200_v4, %v4793_v25 }
 0x1d2   :  { %v2514_v35 = vcombine.low %v8804_v6, %v8803_v1  ;;  %v2496_v56 = vcombine.low %v2488_v14, %v2495_v44  ;;  %v8808_v10 = vrot.slane %v7200_v4, %v4790_v21  ;;  %v8809_v7 = vrot.slane %v7200_v4, %v4799_v27  ;;  %2679 = vst [vmem:[#allocation8 + $0x240] sm:$0xff] %v2479_v9 }
 0x1d3   :  { %v2515_v32 = vcombine.low %v8806_v60, %v8805_v29  ;;  %v2512_v5 = vrot.slane %v2498_v63, %v5340_v54  ;;  %v8810_v12 = vrot.slane %v7200_v4, %v4796_v26 }
 0x1d4   :  { %v2531_v57 = vcombine.low %v8808_v10, %v8807_v61  ;;  %v2522_v11 = vrot.slane %v2514_v35, %v5340_v54  ;;  %2680 = vst [vmem:[#allocation8 + $0x248] sm:$0xff] %v2496_v56 }
 0x1d5   :  { %v2532_v18 = vcombine.low %v8810_v12, %v8809_v7  ;;  %v2529_v3 = vrot.slane %v2515_v32, %v5340_v54  ;;  %v2513_v25 = vcombine.low %v2505_v38, %v2512_v5 }
 0x1d6   :  { %v2539_v17 = vrot.slane %v2531_v57, %v5340_v54 }
 0x1d7   :  { %v2546_v21 = vrot.slane %v2532_v18, %v5340_v54  ;;  %v2530_v20 = vcombine.low %v2522_v11, %v2529_v3  ;;  %2681 = vst [vmem:[#allocation8 + $0x250] sm:$0xff] %v2513_v25 }
 0x1d9   :  { %v2547_v27 = vcombine.low %v2539_v17, %v2546_v21  ;;  %2682 = vst [vmem:[#allocation8 + $0x258] sm:$0xff] %v2530_v20 }
 0x1db   :  { %2683 = vst [vmem:[#allocation8 + $0x260] sm:$0xff] %v2547_v27 }
 0x1dc   :  { %4649 = shalt.err (!%p4646_p0)
}
 0x1dd   :  { %s4650_s30 = scalar_lea.hbm %s8216_s4, 9856 }
 0x1de   :  { %p4651_p1 = scmp.ne.s32.totalorder %s8216_s4, %s4650_s30  ;;  %p4654_p2 = scmp.lt.u32.totalorder %s4650_s30, %s8216_s4 }
 0x1e0   :  { %p4656_p3 = pnand %p4654_p2, %p4651_p1 }
 0x1e2   :  { %4659 = shalt.err (!%p4656_p3)
}
 0x1e3   :  { %4555 = dma.vmem_to_hbm [thread:$0]  %s4553_s3, 9856, %s8216_s4, [#allocation4]  }
 0x1e4   :  { %4664 = dma.done.wait [#allocation4], 9856  }
 0x1e5   :  { %4665 = vsyncadd [#allocation4], 4294957440 }
 0x1e6   :  { %4559 = vsyncpa [#allocation3], 1 }
 0x1e7   :  { %4560 = vsyncpa [#allocation6], 1 }
 0x1e8   :  { %4561 = vsyncpa [#allocation4], 1 }

</bundles_post_ra>
